<compile_context>
chip_gen: v7x
topology: tpu7x:2x2x1
jax: 0.10.0
libtpu: 0.0.40
codegen_flags: <defaults>
</compile_context>

<pallas_src>
import functools

import jax
import jax.numpy as jnp
from jax.experimental import pallas as pl
from jax.experimental.pallas import tpu as pltpu

# small, forward-consistent hyperparameters (scaled-down EncoderLayer defaults)
D_MODEL = 32
D_K = 8
D_V = 8
H = 4
D_FF = 64
EPS = 1e-5            # torch.nn.LayerNorm default
DQK = H * D_K         # 32: width of the Q / K projections
L_VO = H * D_MODEL    # 128: lane width of the fused V·O projection


def _layer_norm(x, g, b):
    # single-pass statistics: var = E[x^2] - mu^2 (fine in f32 at these magnitudes)
    mu = jnp.mean(x, axis=-1, keepdims=True)
    var = jnp.maximum(jnp.mean(x * x, axis=-1, keepdims=True) - mu * mu, 0.0)
    return (x - mu) * jax.lax.rsqrt(var + EPS) * g + b


def encoder_layer_kernel(*refs, batch_tile, seq_len, fused_qkv):
    if fused_qkv:
        q_ref, w_ref, vec_ref, wf_ref, out_ref = refs
    else:
        q_ref, k_ref, v_ref, w_ref, vec_ref, wf_ref, out_ref = refs

    Bt, S = batch_tile, seq_len
    M = Bt * S                            # flattened rows in this grid step

    # ---- packed parameters (3 arrays -> 3 DMAs instead of 16) ----
    w_all = w_ref[...]                    # (D_MODEL, 2*DQK + L_VO) = (32, 192)
    cdt = w_all.dtype                     # MXU operand dtype (f32 or bf16); accumulation f32
    wf = wf_ref[...]                      # (2, D_FF, D_FF) padded container: w1, w2
    vec = vec_ref[...]                    # (10, 128) f32 biases / LN params
    bq = vec[0:1, :DQK]                   # pre-scaled by 1/sqrt(d_k)
    bk = vec[1:2, :DQK]
    bvo = vec[2:3, :]                     # (1, 128): per-head bv_h @ W_O_h
    bo = vec[3:4, :D_MODEL]
    ln1g = vec[4:5, :D_MODEL]
    ln1b = vec[5:6, :D_MODEL]
    b1 = vec[6:7, :D_FF]
    b2 = vec[7:8, :D_MODEL]
    ln2g = vec[8:9, :D_MODEL]
    ln2b = vec[9:10, :D_MODEL]
    w1 = wf[0, :D_MODEL, :]               # (32, 64)
    w2 = wf[1, :, :D_MODEL]               # (64, 32)

    qf = q_ref[...]                       # (M, 32) f32

    # ---- projections over the whole batch tile (MXU M-dim = Bt*S rows) ----
    # wq/bq carry the 1/sqrt(d_k) scale; W_V·W_O is pre-fused into the last 128 lanes.
    if fused_qkv:
        # self-attention fast path: one lane-dense (M,32)x(32,192) matmul
        proj = jnp.dot(qf.astype(cdt), w_all, preferred_element_type=jnp.float32)
        Q = proj[:, :DQK] + bq
        K = proj[:, DQK:2 * DQK] + bk
        Vp = proj[:, 2 * DQK:] + bvo                       # (M, 128)
    else:
        kf = k_ref[...]
        vf = v_ref[...]
        Q = jnp.dot(qf.astype(cdt), w_all[:, :DQK],
                    preferred_element_type=jnp.float32) + bq
        K = jnp.dot(kf.astype(cdt), w_all[:, DQK:2 * DQK],
                    preferred_element_type=jnp.float32) + bk
        Vp = jnp.dot(vf.astype(cdt), w_all[:, 2 * DQK:],
                     preferred_element_type=jnp.float32) + bvo   # (M, 128) lane-dense

    # ---- stack heads along the leading (major) axis: cheap copies, no lane shuffles ----
    Qh = jnp.concatenate([Q[:, h * D_K:(h + 1) * D_K] for h in range(H)],
                         axis=0).reshape(H * Bt, S, D_K)
    Kh = jnp.concatenate([K[:, h * D_K:(h + 1) * D_K] for h in range(H)],
                         axis=0).reshape(H * Bt, S, D_K)
    Vh = jnp.concatenate([Vp[:, h * D_MODEL:(h + 1) * D_MODEL] for h in range(H)],
                         axis=0).reshape(H * Bt, S, D_MODEL)

    # ---- one scores contraction + one softmax for all heads / all batch items ----
    att = jnp.einsum('bqd,bkd->bqk', Qh.astype(cdt), Kh.astype(cdt),
                     preferred_element_type=jnp.float32)   # (H*Bt, S, S)
    att = att - jnp.max(att, axis=-1, keepdims=True)       # numerically stable
    p = jnp.exp(att)
    p = p * pl.reciprocal(jnp.sum(p, axis=-1, keepdims=True), approx=True)

    # ---- one value contraction (W_O already folded into Vp), then sum over heads ----
    ctx = jnp.einsum('bqk,bkd->bqd', p.astype(cdt), Vh.astype(cdt),
                     preferred_element_type=jnp.float32)   # (H*Bt, S, 32)
    mh = sum(ctx[h * Bt:(h + 1) * Bt] for h in range(H)).reshape(M, D_MODEL)

    # ---- post-LN residual (dropout = identity) ----
    x = _layer_norm(qf + mh + bo, ln1g, ln1b)

    # ---- PositionWiseFeedForward (local=False) ----
    hdn = jnp.maximum(
        jnp.dot(x.astype(cdt), w1, preferred_element_type=jnp.float32) + b1, 0.0)
    y = x + b2 + jnp.dot(hdn.astype(cdt), w2, preferred_element_type=jnp.float32)
    out_ref[...] = _layer_norm(y, ln2g, ln2b).astype(out_ref.dtype)


def make_params(key):
    ks = jax.random.split(key, 12)

    def w(k, shape, scale=0.05):
        return jax.random.normal(k, shape, jnp.float32) * scale

    # Linear weights stored already transposed to (in, out); biases as (1, out) rows.
    return dict(
        wq=w(ks[0], (D_MODEL, H * D_K)),  bq=w(ks[1], (1, H * D_K), 0.01),
        wk=w(ks[2], (D_MODEL, H * D_K)),  bk=w(ks[3], (1, H * D_K), 0.01),
        wv=w(ks[4], (D_MODEL, H * D_V)),  bv=w(ks[5], (1, H * D_V), 0.01),
        wo=w(ks[6], (H * D_V, D_MODEL)),  bo=w(ks[7], (1, D_MODEL), 0.01),
        ln1g=jnp.ones((1, D_MODEL), jnp.float32),
        ln1b=jnp.zeros((1, D_MODEL), jnp.float32),
        w1=w(ks[8], (D_MODEL, D_FF)),     b1=w(ks[9], (1, D_FF), 0.01),
        w2=w(ks[10], (D_FF, D_MODEL)),    b2=w(ks[11], (1, D_MODEL), 0.01),
        ln2g=jnp.ones((1, D_MODEL), jnp.float32),
        ln2b=jnp.zeros((1, D_MODEL), jnp.float32),
    )


def pack_params(p, *, dtype=jnp.float32):
    """One-time packing: 16 tensors -> 3 arrays.

    * 1/sqrt(d_k) folded into wq / bq.
    * W_V·W_O folded per head into lane-dense wvo = [W_V_h @ W_O_h]_h of shape (32, 128);
      bv folded through W_O into the 128-lane row bvo (added to Vp, so it is exact w.r.t.
      the computed attention probabilities).
    * `dtype` selects the MXU operand precision (bf16 recommended on v5e); biases and
      LayerNorm parameters always stay f32.
    """
    scale = 1.0 / (D_K ** 0.5)
    wvo = jnp.concatenate(
        [p["wv"][:, h * D_V:(h + 1) * D_V] @ p["wo"][h * D_V:(h + 1) * D_V, :]
         for h in range(H)], axis=1)                       # (D_MODEL, H*D_MODEL) = (32, 128)
    bvo = jnp.concatenate(
        [p["bv"][0, h * D_V:(h + 1) * D_V] @ p["wo"][h * D_V:(h + 1) * D_V, :]
         for h in range(H)], axis=0)                       # (H*D_MODEL,) = (128,)
    w_all = jnp.concatenate([p["wq"] * scale, p["wk"], wvo], axis=1).astype(dtype)

    w_ffn = jnp.zeros((2, D_FF, D_FF), jnp.float32)
    w_ffn = w_ffn.at[0, :D_MODEL, :].set(p["w1"])
    w_ffn = w_ffn.at[1, :, :D_MODEL].set(p["w2"])
    w_ffn = w_ffn.astype(dtype)

    vecs = jnp.zeros((10, L_VO), jnp.float32)
    vecs = vecs.at[0, :DQK].set(p["bq"][0] * scale)
    vecs = vecs.at[1, :DQK].set(p["bk"][0])
    vecs = vecs.at[2, :].set(bvo)
    vecs = vecs.at[3, :D_MODEL].set(p["bo"][0])
    vecs = vecs.at[4, :D_MODEL].set(p["ln1g"][0])
    vecs = vecs.at[5, :D_MODEL].set(p["ln1b"][0])
    vecs = vecs.at[6, :D_FF].set(p["b1"][0])
    vecs = vecs.at[7, :D_MODEL].set(p["b2"][0])
    vecs = vecs.at[8, :D_MODEL].set(p["ln2g"][0])
    vecs = vecs.at[9, :D_MODEL].set(p["ln2b"][0])
    return w_all, vecs, w_ffn


def _default_batch_tiles(B, S):
    """Generation-aware grid size: 2 steps only on dual-TensorCore parts (v7x), else 1.

    On single-TC v5e/v6e the grid is a sequential loop, so a second step is pure per-step
    overhead (~0.35us + duplicated weight unpack).  TODO(synk): benchmark 1 vs 2 on v7x;
    at ~16 rows per core the split may still be net-negative.
    """
    try:
        kind = jax.devices()[0].device_kind.lower()
    except Exception:
        kind = ""
    dual_tc = ("v7" in kind) or ("tpu7" in kind)
    if dual_tc and B % 2 == 0 and ((B // 2) * S) % 8 == 0:
        return 2
    return 1


def encoder_layer(q, k, v, packed, *, batch_tiles=None):
    """EncoderLayer forward (attention_mask / geometric_attention / grid_pos are None)."""
    w_all, vecs, w_ffn = packed
    B, S, D = q.shape
    assert D == D_MODEL
    fused_qkv = (q is k) and (k is v)          # self-attention fast path
    if batch_tiles is None:
        batch_tiles = _default_batch_tiles(B, S)
    assert B % batch_tiles == 0
    bt = B // batch_tiles
    rows = bt * S                              # flattened rows per grid step
    assert rows % 8 == 0                       # sublane-aligned block

    data_spec = pl.BlockSpec((rows, D), lambda i: (i, 0))
    w_spec = pl.BlockSpec(w_all.shape, lambda i: (0, 0))
    vec_spec = pl.BlockSpec(vecs.shape, lambda i: (0, 0))
    wf_spec = pl.BlockSpec(w_ffn.shape, lambda i: (0, 0, 0))

    # free, contiguous reshape: fold batch into the matmul M dimension
    qf = q.reshape(B * S, D)
    if fused_qkv:
        in_specs = [data_spec, w_spec, vec_spec, wf_spec]
        args = (qf, w_all, vecs, w_ffn)
    else:
        in_specs = [data_spec, data_spec, data_spec, w_spec, vec_spec, wf_spec]
        args = (qf, k.reshape(B * S, D), v.reshape(B * S, D), w_all, vecs, w_ffn)

    kernel = functools.partial(encoder_layer_kernel, batch_tile=bt, seq_len=S,
                               fused_qkv=fused_qkv)
    out = pl.pallas_call(
        kernel,
        out_shape=jax.ShapeDtypeStruct((B * S, D), jnp.float32),
        grid=(batch_tiles,),
        in_specs=in_specs,
        out_specs=data_spec,
        compiler_params=pltpu.CompilerParams(dimension_semantics=("parallel",)),
    )(*args)
    return out.reshape(B, S, D)


def reference(q, k, v, p):
    """Plain-JAX reference reproducing the PyTorch forward (unpacked params)."""
    B, S, _ = q.shape
    Q = (q @ p["wq"] + p["bq"][0]).reshape(B, S, H, D_K).transpose(0, 2, 1, 3)
    K = (k @ p["wk"] + p["bk"][0]).reshape(B, S, H, D_K).transpose(0, 2, 1, 3)
    V = (v @ p["wv"] + p["bv"][0]).reshape(B, S, H, D_V).transpose(0, 2, 1, 3)
    att = jnp.einsum("bhqd,bhkd->bhqk", Q, K) / (D_K ** 0.5)
    att = jax.nn.softmax(att, axis=-1)
    o = jnp.einsum("bhqk,bhkd->bhqd", att, V).transpose(0, 2, 1, 3).reshape(B, S, H * D_V)
    mh = o @ p["wo"] + p["bo"][0]

    def ln(x, g, b):
        mu = x.mean(-1, keepdims=True)
        var = ((x - mu) ** 2).mean(-1, keepdims=True)
        return (x - mu) * jax.lax.rsqrt(var + EPS) * g[0] + b[0]

    x = ln(q + mh, p["ln1g"], p["ln1b"])
    ff = jnp.maximum(x @ p["w1"] + p["b1"][0], 0.0) @ p["w2"] + p["b2"][0]
    return ln(x + ff, p["ln2g"], p["ln2b"])


if __name__ == "__main__":
    B, S = 4, 8
    root = jax.random.PRNGKey(0)
    kq, kk, kv, kp = jax.random.split(root, 4)
    q = jax.random.normal(kq, (B, S, D_MODEL), jnp.float32)
    k = jax.random.normal(kk, (B, S, D_MODEL), jnp.float32)
    v = jax.random.normal(kv, (B, S, D_MODEL), jnp.float32)
    params = make_params(kp)

    # ---- f32 weights (exact path) ----
    packed_f32 = pack_params(params)

    # cross-attention (q, k, v distinct)
    out = jax.block_until_ready(encoder_layer(q, k, v, packed_f32))
    ref = reference(q, k, v, params)
    assert out.shape == (B, S, D_MODEL)
    # tolerance covers the approximate EUP reciprocal in the softmax denominator and the
    # pack-time W_V·W_O reassociation
    assert jnp.allclose(out, ref, atol=1e-3, rtol=1e-3), float(jnp.abs(out - ref).max())

    # self-attention fast path (fused [wq|wk|wvo] projection)
    out_sa = jax.block_until_ready(encoder_layer(q, q, q, packed_f32))
    ref_sa = reference(q, q, q, params)
    assert jnp.allclose(out_sa, ref_sa, atol=1e-3, rtol=1e-3), \
        float(jnp.abs(out_sa - ref_sa).max())

    # ---- bf16 MXU operands (v5e-oriented); accumulation and VPU/LN math stay f32 ----
    packed_bf16 = pack_params(params, dtype=jnp.bfloat16)
    out_bf16 = jax.block_until_ready(encoder_layer(q, k, v, packed_bf16))
    assert jnp.allclose(out_bf16, ref, atol=3e-2, rtol=3e-2), \
        float(jnp.abs(out_bf16 - ref).max())

    print("KERNEL_OK")
</pallas_src>

<mosaic_0001>
module attributes {stable_mosaic.version = 11 : i64} {
  func.func @encoder_layer_kernel(%arg0: i32, %arg1: memref<32x32xf32, #tpu.memory_space<vmem>>, %arg2: memref<32x32xf32, #tpu.memory_space<vmem>>, %arg3: memref<32x32xf32, #tpu.memory_space<vmem>>, %arg4: memref<32x192xf32, #tpu.memory_space<vmem>>, %arg5: memref<10x128xf32, #tpu.memory_space<vmem>>, %arg6: memref<2x64x64xf32, #tpu.memory_space<vmem>>, %arg7: memref<32x32xf32, #tpu.memory_space<vmem>>) attributes {dimension_semantics = [#tpu.dimension_semantics<parallel>], iteration_bounds = array<i64: 1>, scalar_prefetch = 0 : i64, scratch_operands = 0 : i64, tpu.core_type = #tpu.core_type<tc>, window_params = [{transform_indices = @transform_0, window_bounds = array<i64: 32, 32>}, {transform_indices = @transform_1, window_bounds = array<i64: 32, 32>}, {transform_indices = @transform_2, window_bounds = array<i64: 32, 32>}, {pipeline_mode = #tpu.pipeline_mode<synchronous>, transform_indices = @transform_3, window_bounds = array<i64: 32, 192>}, {pipeline_mode = #tpu.pipeline_mode<synchronous>, transform_indices = @transform_4, window_bounds = array<i64: 10, 128>}, {pipeline_mode = #tpu.pipeline_mode<synchronous>, transform_indices = @transform_5, window_bounds = array<i64: 2, 64, 64>}, {transform_indices = @transform_6, window_bounds = array<i64: 32, 32>}]} {
    %c0 = arith.constant 0 : index
    %c0_0 = arith.constant 0 : index
    %0 = vector.load %arg4[%c0, %c0_0] : memref<32x192xf32, #tpu.memory_space<vmem>>, vector<32x192xf32>
    %c0_1 = arith.constant 0 : index
    %c0_2 = arith.constant 0 : index
    %c0_3 = arith.constant 0 : index
    %1 = vector.load %arg6[%c0_1, %c0_2, %c0_3] : memref<2x64x64xf32, #tpu.memory_space<vmem>>, vector<2x64x64xf32>
    %c0_4 = arith.constant 0 : index
    %c0_5 = arith.constant 0 : index
    %2 = vector.load %arg5[%c0_4, %c0_5] : memref<10x128xf32, #tpu.memory_space<vmem>>, vector<10x128xf32>
    %3 = vector.extract_strided_slice %2 {offsets = [0, 0], sizes = [1, 32], strides = [1, 1]} : vector<10x128xf32> to vector<1x32xf32>
    %4 = vector.extract_strided_slice %2 {offsets = [1, 0], sizes = [1, 32], strides = [1, 1]} : vector<10x128xf32> to vector<1x32xf32>
    %5 = vector.extract_strided_slice %2 {offsets = [2, 0], sizes = [1, 128], strides = [1, 1]} : vector<10x128xf32> to vector<1x128xf32>
    %6 = vector.extract_strided_slice %2 {offsets = [3, 0], sizes = [1, 32], strides = [1, 1]} : vector<10x128xf32> to vector<1x32xf32>
    %7 = vector.extract_strided_slice %2 {offsets = [4, 0], sizes = [1, 32], strides = [1, 1]} : vector<10x128xf32> to vector<1x32xf32>
    %8 = vector.extract_strided_slice %2 {offsets = [5, 0], sizes = [1, 32], strides = [1, 1]} : vector<10x128xf32> to vector<1x32xf32>
    %9 = vector.extract_strided_slice %2 {offsets = [6, 0], sizes = [1, 64], strides = [1, 1]} : vector<10x128xf32> to vector<1x64xf32>
    %10 = vector.extract_strided_slice %2 {offsets = [7, 0], sizes = [1, 32], strides = [1, 1]} : vector<10x128xf32> to vector<1x32xf32>
    %11 = vector.extract_strided_slice %2 {offsets = [8, 0], sizes = [1, 32], strides = [1, 1]} : vector<10x128xf32> to vector<1x32xf32>
    %12 = vector.extract_strided_slice %2 {offsets = [9, 0], sizes = [1, 32], strides = [1, 1]} : vector<10x128xf32> to vector<1x32xf32>
    %13 = vector.extract_strided_slice %1 {offsets = [0, 0, 0], sizes = [1, 32, 64], strides = [1, 1, 1]} : vector<2x64x64xf32> to vector<1x32x64xf32>
    %14 = vector.shape_cast %13 : vector<1x32x64xf32> to vector<32x64xf32>
    %15 = vector.extract_strided_slice %1 {offsets = [1, 0, 0], sizes = [1, 64, 32], strides = [1, 1, 1]} : vector<2x64x64xf32> to vector<1x64x32xf32>
    %16 = vector.shape_cast %15 : vector<1x64x32xf32> to vector<64x32xf32>
    %c0_6 = arith.constant 0 : index
    %c0_7 = arith.constant 0 : index
    %17 = vector.load %arg1[%c0_6, %c0_7] : memref<32x32xf32, #tpu.memory_space<vmem>>, vector<32x32xf32>
    %c0_8 = arith.constant 0 : index
    %c0_9 = arith.constant 0 : index
    %18 = vector.load %arg2[%c0_8, %c0_9] : memref<32x32xf32, #tpu.memory_space<vmem>>, vector<32x32xf32>
    %c0_10 = arith.constant 0 : index
    %c0_11 = arith.constant 0 : index
    %19 = vector.load %arg3[%c0_10, %c0_11] : memref<32x32xf32, #tpu.memory_space<vmem>>, vector<32x32xf32>
    %20 = vector.extract_strided_slice %0 {offsets = [0, 0], sizes = [32, 32], strides = [1, 1]} : vector<32x192xf32> to vector<32x32xf32>
    %cst = arith.constant dense<0.000000e+00> : vector<32x32xf32>
    %21 = tpu.matmul %17, %20, %cst {dimension_numbers = #tpu.dot_dimension_numbers<[1], [0], [0], [1], [0, 0, 1, 1], [], []>} : vector<32x32xf32>, vector<32x32xf32>, vector<32x32xf32> -> vector<32x32xf32>
    %22 = vector.broadcast %3 : vector<1x32xf32> to vector<32x32xf32>
    %23 = arith.addf %21, %22 : vector<32x32xf32>
    %24 = vector.extract_strided_slice %0 {offsets = [0, 32], sizes = [32, 32], strides = [1, 1]} : vector<32x192xf32> to vector<32x32xf32>
    %cst_12 = arith.constant dense<0.000000e+00> : vector<32x32xf32>
    %25 = tpu.matmul %18, %24, %cst_12 {dimension_numbers = #tpu.dot_dimension_numbers<[1], [0], [0], [1], [0, 0, 1, 1], [], []>} : vector<32x32xf32>, vector<32x32xf32>, vector<32x32xf32> -> vector<32x32xf32>
    %26 = vector.broadcast %4 : vector<1x32xf32> to vector<32x32xf32>
    %27 = arith.addf %25, %26 : vector<32x32xf32>
    %28 = vector.extract_strided_slice %0 {offsets = [0, 64], sizes = [32, 128], strides = [1, 1]} : vector<32x192xf32> to vector<32x128xf32>
    %cst_13 = arith.constant dense<0.000000e+00> : vector<32x128xf32>
    %29 = tpu.matmul %19, %28, %cst_13 {dimension_numbers = #tpu.dot_dimension_numbers<[1], [0], [0], [1], [0, 0, 1, 1], [], []>} : vector<32x32xf32>, vector<32x128xf32>, vector<32x128xf32> -> vector<32x128xf32>
    %30 = vector.broadcast %5 : vector<1x128xf32> to vector<32x128xf32>
    %31 = arith.addf %29, %30 : vector<32x128xf32>
    %32 = vector.extract_strided_slice %23 {offsets = [0, 0], sizes = [32, 8], strides = [1, 1]} : vector<32x32xf32> to vector<32x8xf32>
    %33 = vector.extract_strided_slice %23 {offsets = [0, 8], sizes = [32, 8], strides = [1, 1]} : vector<32x32xf32> to vector<32x8xf32>
    %34 = vector.extract_strided_slice %23 {offsets = [0, 16], sizes = [32, 8], strides = [1, 1]} : vector<32x32xf32> to vector<32x8xf32>
    %35 = vector.extract_strided_slice %23 {offsets = [0, 24], sizes = [32, 8], strides = [1, 1]} : vector<32x32xf32> to vector<32x8xf32>
    %36 = tpu.concatenate %32, %33, %34, %35 in 0 : vector<32x8xf32>, vector<32x8xf32>, vector<32x8xf32>, vector<32x8xf32> -> vector<128x8xf32>
    %37 = vector.shape_cast %36 : vector<128x8xf32> to vector<16x8x8xf32>
    %38 = vector.extract_strided_slice %27 {offsets = [0, 0], sizes = [32, 8], strides = [1, 1]} : vector<32x32xf32> to vector<32x8xf32>
    %39 = vector.extract_strided_slice %27 {offsets = [0, 8], sizes = [32, 8], strides = [1, 1]} : vector<32x32xf32> to vector<32x8xf32>
    %40 = vector.extract_strided_slice %27 {offsets = [0, 16], sizes = [32, 8], strides = [1, 1]} : vector<32x32xf32> to vector<32x8xf32>
    %41 = vector.extract_strided_slice %27 {offsets = [0, 24], sizes = [32, 8], strides = [1, 1]} : vector<32x32xf32> to vector<32x8xf32>
    %42 = tpu.concatenate %38, %39, %40, %41 in 0 : vector<32x8xf32>, vector<32x8xf32>, vector<32x8xf32>, vector<32x8xf32> -> vector<128x8xf32>
    %43 = vector.shape_cast %42 : vector<128x8xf32> to vector<16x8x8xf32>
    %44 = vector.extract_strided_slice %31 {offsets = [0, 0], sizes = [32, 32], strides = [1, 1]} : vector<32x128xf32> to vector<32x32xf32>
    %45 = vector.extract_strided_slice %31 {offsets = [0, 32], sizes = [32, 32], strides = [1, 1]} : vector<32x128xf32> to vector<32x32xf32>
    %46 = vector.extract_strided_slice %31 {offsets = [0, 64], sizes = [32, 32], strides = [1, 1]} : vector<32x128xf32> to vector<32x32xf32>
    %47 = vector.extract_strided_slice %31 {offsets = [0, 96], sizes = [32, 32], strides = [1, 1]} : vector<32x128xf32> to vector<32x32xf32>
    %48 = tpu.concatenate %44, %45, %46, %47 in 0 : vector<32x32xf32>, vector<32x32xf32>, vector<32x32xf32>, vector<32x32xf32> -> vector<128x32xf32>
    %49 = vector.shape_cast %48 : vector<128x32xf32> to vector<16x8x32xf32>
    "tpu.trace_start"() <{level = 10 : i32, message = "bqd,bkd->bqk"}> : () -> ()
    %cst_14 = arith.constant dense<0.000000e+00> : vector<16x8x8xf32>
    %50 = tpu.matmul %37, %43, %cst_14 {dimension_numbers = #tpu.dot_dimension_numbers<[2], [2], [1], [1], [0, 0, 0, 1, 1, 1], [0], [0]>} : vector<16x8x8xf32>, vector<16x8x8xf32>, vector<16x8x8xf32> -> vector<16x8x8xf32>
    "tpu.trace_stop"() : () -> ()
    %cst_15 = arith.constant dense<0xFF800000> : vector<16x8xf32>
    %51 = vector.multi_reduction <maximumf>, %50, %cst_15 [2] : vector<16x8x8xf32> to vector<16x8xf32>
    %52 = vector.shape_cast %51 : vector<16x8xf32> to vector<16x8x1xf32>
    %53 = vector.broadcast %52 : vector<16x8x1xf32> to vector<16x8x8xf32>
    %54 = arith.subf %50, %53 : vector<16x8x8xf32>
    %55 = math.exp %54 : vector<16x8x8xf32>
    %cst_16 = arith.constant dense<0.000000e+00> : vector<16x8xf32>
    %56 = vector.multi_reduction <add>, %55, %cst_16 [2] : vector<16x8x8xf32> to vector<16x8xf32>
    %57 = vector.shape_cast %56 : vector<16x8xf32> to vector<16x8x1xf32>
    %58 = tpu.reciprocal %57 {approx = true} : vector<16x8x1xf32> -> vector<16x8x1xf32>
    %59 = vector.broadcast %58 : vector<16x8x1xf32> to vector<16x8x8xf32>
    %60 = arith.mulf %55, %59 : vector<16x8x8xf32>
    "tpu.trace_start"() <{level = 10 : i32, message = "bqk,bkd->bqd"}> : () -> ()
    %cst_17 = arith.constant dense<0.000000e+00> : vector<16x8x32xf32>
    %61 = tpu.matmul %60, %49, %cst_17 {dimension_numbers = #tpu.dot_dimension_numbers<[2], [1], [1], [2], [0, 0, 0, 1, 1, 2], [0], [0]>} : vector<16x8x8xf32>, vector<16x8x32xf32>, vector<16x8x32xf32> -> vector<16x8x32xf32>
    "tpu.trace_stop"() : () -> ()
    %62 = vector.extract_strided_slice %61 {offsets = [0, 0, 0], sizes = [4, 8, 32], strides = [1, 1, 1]} : vector<16x8x32xf32> to vector<4x8x32xf32>
    %cst_18 = arith.constant 0.000000e+00 : f32
    %63 = vector.broadcast %cst_18 : f32 to vector<4x8x32xf32>
    %64 = arith.addf %63, %62 : vector<4x8x32xf32>
    %65 = vector.extract_strided_slice %61 {offsets = [4, 0, 0], sizes = [4, 8, 32], strides = [1, 1, 1]} : vector<16x8x32xf32> to vector<4x8x32xf32>
    %66 = arith.addf %64, %65 : vector<4x8x32xf32>
    %67 = vector.extract_strided_slice %61 {offsets = [8, 0, 0], sizes = [4, 8, 32], strides = [1, 1, 1]} : vector<16x8x32xf32> to vector<4x8x32xf32>
    %68 = arith.addf %66, %67 : vector<4x8x32xf32>
    %69 = vector.extract_strided_slice %61 {offsets = [12, 0, 0], sizes = [4, 8, 32], strides = [1, 1, 1]} : vector<16x8x32xf32> to vector<4x8x32xf32>
    %70 = arith.addf %68, %69 : vector<4x8x32xf32>
    %71 = vector.shape_cast %70 : vector<4x8x32xf32> to vector<32x32xf32>
    %72 = arith.addf %17, %71 : vector<32x32xf32>
    %73 = vector.broadcast %6 : vector<1x32xf32> to vector<32x32xf32>
    %74 = arith.addf %72, %73 : vector<32x32xf32>
    %cst_19 = arith.constant dense<0.000000e+00> : vector<32xf32>
    %75 = vector.multi_reduction <add>, %74, %cst_19 [1] : vector<32x32xf32> to vector<32xf32>
    %76 = vector.shape_cast %75 : vector<32xf32> to vector<32x1xf32>
    %cst_20 = arith.constant 3.200000e+01 : f32
    %77 = vector.broadcast %cst_20 : f32 to vector<32x1xf32>
    %78 = arith.divf %76, %77 : vector<32x1xf32>
    %79 = arith.mulf %74, %74 : vector<32x32xf32>
    %cst_21 = arith.constant dense<0.000000e+00> : vector<32xf32>
    %80 = vector.multi_reduction <add>, %79, %cst_21 [1] : vector<32x32xf32> to vector<32xf32>
    %81 = vector.shape_cast %80 : vector<32xf32> to vector<32x1xf32>
    %cst_22 = arith.constant 3.200000e+01 : f32
    %82 = vector.broadcast %cst_22 : f32 to vector<32x1xf32>
    %83 = arith.divf %81, %82 : vector<32x1xf32>
    %84 = arith.mulf %78, %78 : vector<32x1xf32>
    %85 = arith.subf %83, %84 : vector<32x1xf32>
    %cst_23 = arith.constant 0.000000e+00 : f32
    %86 = vector.broadcast %cst_23 : f32 to vector<32x1xf32>
    %87 = arith.maximumf %85, %86 : vector<32x1xf32>
    %88 = vector.broadcast %78 : vector<32x1xf32> to vector<32x32xf32>
    %89 = arith.subf %74, %88 : vector<32x32xf32>
    %cst_24 = arith.constant 9.99999974E-6 : f32
    %90 = vector.broadcast %cst_24 : f32 to vector<32x1xf32>
    %91 = arith.addf %87, %90 : vector<32x1xf32>
    %92 = math.rsqrt %91 : vector<32x1xf32>
    %93 = vector.broadcast %92 : vector<32x1xf32> to vector<32x32xf32>
    %94 = arith.mulf %89, %93 : vector<32x32xf32>
    %95 = vector.broadcast %7 : vector<1x32xf32> to vector<32x32xf32>
    %96 = arith.mulf %94, %95 : vector<32x32xf32>
    %97 = vector.broadcast %8 : vector<1x32xf32> to vector<32x32xf32>
    %98 = arith.addf %96, %97 : vector<32x32xf32>
    %cst_25 = arith.constant dense<0.000000e+00> : vector<32x64xf32>
    %99 = tpu.matmul %98, %14, %cst_25 {dimension_numbers = #tpu.dot_dimension_numbers<[1], [0], [0], [1], [0, 0, 1, 1], [], []>} : vector<32x32xf32>, vector<32x64xf32>, vector<32x64xf32> -> vector<32x64xf32>
    %100 = vector.broadcast %9 : vector<1x64xf32> to vector<32x64xf32>
    %101 = arith.addf %99, %100 : vector<32x64xf32>
    %cst_26 = arith.constant 0.000000e+00 : f32
    %102 = vector.broadcast %cst_26 : f32 to vector<32x64xf32>
    %103 = arith.maximumf %101, %102 : vector<32x64xf32>
    %104 = vector.broadcast %10 : vector<1x32xf32> to vector<32x32xf32>
    %105 = arith.addf %98, %104 : vector<32x32xf32>
    %cst_27 = arith.constant dense<0.000000e+00> : vector<32x32xf32>
    %106 = tpu.matmul %103, %16, %cst_27 {dimension_numbers = #tpu.dot_dimension_numbers<[1], [0], [0], [1], [0, 0, 1, 1], [], []>} : vector<32x64xf32>, vector<64x32xf32>, vector<32x32xf32> -> vector<32x32xf32>
    %107 = arith.addf %105, %106 : vector<32x32xf32>
    %cst_28 = arith.constant dense<0.000000e+00> : vector<32xf32>
    %108 = vector.multi_reduction <add>, %107, %cst_28 [1] : vector<32x32xf32> to vector<32xf32>
    %109 = vector.shape_cast %108 : vector<32xf32> to vector<32x1xf32>
    %cst_29 = arith.constant 3.200000e+01 : f32
    %110 = vector.broadcast %cst_29 : f32 to vector<32x1xf32>
    %111 = arith.divf %109, %110 : vector<32x1xf32>
    %112 = arith.mulf %107, %107 : vector<32x32xf32>
    %cst_30 = arith.constant dense<0.000000e+00> : vector<32xf32>
    %113 = vector.multi_reduction <add>, %112, %cst_30 [1] : vector<32x32xf32> to vector<32xf32>
    %114 = vector.shape_cast %113 : vector<32xf32> to vector<32x1xf32>
    %cst_31 = arith.constant 3.200000e+01 : f32
    %115 = vector.broadcast %cst_31 : f32 to vector<32x1xf32>
    %116 = arith.divf %114, %115 : vector<32x1xf32>
    %117 = arith.mulf %111, %111 : vector<32x1xf32>
    %118 = arith.subf %116, %117 : vector<32x1xf32>
    %cst_32 = arith.constant 0.000000e+00 : f32
    %119 = vector.broadcast %cst_32 : f32 to vector<32x1xf32>
    %120 = arith.maximumf %118, %119 : vector<32x1xf32>
    %121 = vector.broadcast %111 : vector<32x1xf32> to vector<32x32xf32>
    %122 = arith.subf %107, %121 : vector<32x32xf32>
    %cst_33 = arith.constant 9.99999974E-6 : f32
    %123 = vector.broadcast %cst_33 : f32 to vector<32x1xf32>
    %124 = arith.addf %120, %123 : vector<32x1xf32>
    %125 = math.rsqrt %124 : vector<32x1xf32>
    %126 = vector.broadcast %125 : vector<32x1xf32> to vector<32x32xf32>
    %127 = arith.mulf %122, %126 : vector<32x32xf32>
    %128 = vector.broadcast %11 : vector<1x32xf32> to vector<32x32xf32>
    %129 = arith.mulf %127, %128 : vector<32x32xf32>
    %130 = vector.broadcast %12 : vector<1x32xf32> to vector<32x32xf32>
    %131 = arith.addf %129, %130 : vector<32x32xf32>
    %c0_34 = arith.constant 0 : index
    %c0_35 = arith.constant 0 : index
    %132 = vector.load %arg7[%c0_34, %c0_35] : memref<32x32xf32, #tpu.memory_space<vmem>>, vector<32x32xf32>
    tpu.vector_store %arg7[%c0_34, %c0_35], %131 {strides = array<i32>} : memref<32x32xf32, #tpu.memory_space<vmem>>, vector<32x32xf32>,
    return
  }
  func.func @transform_0(%arg0: i32) -> (i32, i32) {
    %c0_i32 = arith.constant 0 : i32
    %c0_i32_0 = arith.constant 0 : i32
    return %arg0, %c0_i32 : i32, i32
  }
  func.func @transform_1(%arg0: i32) -> (i32, i32) {
    %c0_i32 = arith.constant 0 : i32
    %c0_i32_0 = arith.constant 0 : i32
    return %arg0, %c0_i32 : i32, i32
  }
  func.func @transform_2(%arg0: i32) -> (i32, i32) {
    %c0_i32 = arith.constant 0 : i32
    %c0_i32_0 = arith.constant 0 : i32
    return %arg0, %c0_i32 : i32, i32
  }
  func.func @transform_3(%arg0: i32) -> (i32, i32) {
    %c0_i32 = arith.constant 0 : i32
    %c0_i32_0 = arith.constant 0 : i32
    %c0_i32_1 = arith.constant 0 : i32
    return %c0_i32, %c0_i32_0 : i32, i32
  }
  func.func @transform_4(%arg0: i32) -> (i32, i32) {
    %c0_i32 = arith.constant 0 : i32
    %c0_i32_0 = arith.constant 0 : i32
    %c0_i32_1 = arith.constant 0 : i32
    return %c0_i32, %c0_i32_0 : i32, i32
  }
  func.func @transform_5(%arg0: i32) -> (i32, i32, i32) {
    %c0_i32 = arith.constant 0 : i32
    %c0_i32_0 = arith.constant 0 : i32
    %c0_i32_1 = arith.constant 0 : i32
    %c0_i32_2 = arith.constant 0 : i32
    return %c0_i32, %c0_i32_0, %c0_i32_1 : i32, i32, i32
  }
  func.func @transform_6(%arg0: i32) -> (i32, i32) {
    %c0_i32 = arith.constant 0 : i32
    %c0_i32_0 = arith.constant 0 : i32
    return %arg0, %c0_i32 : i32, i32
  }
}

</mosaic_0001>

<bundles_post_ra>
// kernel: tpu_custom_call.1
= control target key start
LH: loop header
LB: loop body
LE: loop exit
PB: predicated region body
PF: predicated region fallthrough
CT: control target
= control target key end

     0   :  { %11 = vsyncpa [#allocation3], 0  ;;  %s4980_s0 = inlined_call_operand.hbm [shape: f32[32,32], index: 0, kind: input, shape index: {}]   ;;  %s4981_s1 = inlined_call_operand.hbm [shape: f32[32,32], index: 1, kind: input, shape index: {}]   ;;  %s4982_s2 = inlined_call_operand.hbm [shape: f32[32,32], index: 2, kind: input, shape index: {}]   ;;  %s4983_s3 = inlined_call_operand.hbm [shape: f32[32,192], index: 3, kind: input, shape index: {}]   ;;  %s4984_s4 = inlined_call_operand.hbm [shape: f32[10,128], index: 4, kind: input, shape index: {}]   ;;  %s4985_s5 = inlined_call_operand.hbm [shape: f32[2,64,64], index: 5, kind: input, shape index: {}]   ;;  %s4986_s6 = inlined_call_operand.hbm [shape: f32[32,32], index: 6, kind: output, shape index: {}]  }
   0x1   :  { %12 = vsyncpa [#allocation6], 0 }
   0x2   :  { %13 = vsyncpa [#allocation9], 0 }
   0x3   :  { %14 = vsyncpa [#allocation12], 0 }
   0x4   :  { %15 = vsyncpa [#allocation4], 0  ;;  %s4301_s21 = smov [#allocation5]   ;;  %s4302_s23 = smov [#allocation8]  }
   0x5   :  { %s33_s22 = sshll.u32 %s4301_s21, 4  ;;  %s57_s24 = sshll.u32 %s4302_s23, 4  ;;  %s34_s22 = int_to_ptr.vmem [resolvable:$true] %s33_s22  ;;  %s4355_s24 = int_to_ptr.vmem [resolvable:$true] %s57_s24 }
   0x6   :  { %s4137_s27 = scalar_lea.hbm %s4981_s1, 512 }
   0x7   :  { %p4138_p0 = scmp.ne.s32.totalorder %s4981_s1, %s4137_s27  ;;  %p4141_p1 = scmp.lt.u32.totalorder %s4137_s27, %s4981_s1 }
   0x9   :  { %p4143_p2 = pnand %p4141_p1, %p4138_p0 }
   0xb   :  { %4146 = shalt.err (!%p4143_p2)
}
   0xc   :  { %s4147_s8 = scalar_lea.vmem %s34_s22, 512  ;;  %p4152_p4 = scmp.lt.s32.totalorder %s34_s22, %s34_s22 }
   0xd   :  { %p4148_p3 = scmp.ne.s32.totalorder %s34_s22, %s4147_s8  ;;  %p4153_p5 = scmp.lt.s32.totalorder %s4147_s8, %s4147_s8 }
   0xf   :  { %p4154_p6 = por %p4153_p5, %p4152_p4 }
  0x11   :  { %p4155_p7 = pnand %p4154_p6, %p4148_p3 }
  0x13   :  { %4158 = shalt.err (!%p4155_p7)
}
  0x14   :  { %s4303_s9 = smov 128   ;;  %s4304_s10 = smov 8  }
  0x15   :  { %39 = dma.hbm_to_vmem [thread:$0]  %s4981_s1, 512, %s34_s22, [#allocation6], %s4303_s9, %s4303_s9, %s4304_s10  }
  0x16   :  { %s4159_s15 = scalar_lea.hbm %s4983_s3, 1024 }
  0x17   :  { %p4160_p8 = scmp.ne.s32.totalorder %s4983_s3, %s4159_s15  ;;  %p4163_p9 = scmp.lt.u32.totalorder %s4159_s15, %s4983_s3 }
  0x19   :  { %p4165_p10 = pnand %p4163_p9, %p4160_p8 }
  0x1b   :  { %4168 = shalt.err (!%p4165_p10)
}
  0x1c   :  { %s4169_s20 = scalar_lea.vmem %s4355_s24, 1024  ;;  %p4174_p12 = scmp.lt.s32.totalorder %s4355_s24, %s4355_s24 }
  0x1d   :  { %p4170_p11 = scmp.ne.s32.totalorder %s4355_s24, %s4169_s20  ;;  %p4175_p13 = scmp.lt.s32.totalorder %s4169_s20, %s4169_s20 }
  0x1f   :  { %p4176_p0 = por %p4175_p13, %p4174_p12 }
  0x21   :  { %p4177_p1 = pnand %p4176_p0, %p4170_p11 }
  0x23   :  { %4180 = shalt.err (!%p4177_p1)
}
  0x24   :  { %s4305_s1 = smov 256   ;;  %s4306_s21 = smov 16  }
  0x25   :  { %63 = dma.hbm_to_vmem [thread:$0]  %s4983_s3, 1024, %s4355_s24, [#allocation9], %s4305_s1, %s4305_s1, %s4306_s21  }
  0x26   :  { %s4307_s25 = smov [#allocation2]   ;;  %s4308_s27 = smov [#allocation7]  }
  0x27   :  { %s21_s26 = sshll.u32 %s4307_s25, 4  ;;  %s45_s28 = sshll.u32 %s4308_s27, 4  ;;  %s22_s26 = int_to_ptr.vmem [resolvable:$true] %s21_s26  ;;  %s4389_s28 = int_to_ptr.vmem [resolvable:$true] %s45_s28 }
  0x28   :  { %s4181_s7 = scalar_lea.hbm %s4980_s0, 512 }
  0x29   :  { %p4182_p2 = scmp.ne.s32.totalorder %s4980_s0, %s4181_s7  ;;  %p4185_p3 = scmp.lt.u32.totalorder %s4181_s7, %s4980_s0 }
  0x2b   :  { %p4187_p4 = pnand %p4185_p3, %p4182_p2 }
  0x2d   :  { %4190 = shalt.err (!%p4187_p4)
}
  0x2e   :  { %s4191_s3 = scalar_lea.vmem %s22_s26, 512  ;;  %p4196_p6 = scmp.lt.s32.totalorder %s22_s26, %s22_s26 }
  0x2f   :  { %p4192_p5 = scmp.ne.s32.totalorder %s22_s26, %s4191_s3  ;;  %p4197_p7 = scmp.lt.s32.totalorder %s4191_s3, %s4191_s3 }
  0x31   :  { %p4198_p8 = por %p4197_p7, %p4196_p6 }
  0x33   :  { %p4199_p9 = pnand %p4198_p8, %p4192_p5 }
  0x35   :  { %4202 = shalt.err (!%p4199_p9)
}
  0x36   :  { %27 = dma.hbm_to_vmem [thread:$0]  %s4980_s0, 512, %s22_s26, [#allocation3], %s4303_s9, %s4303_s9, %s4304_s10  }
  0x37   :  { %s4203_s17 = scalar_lea.hbm %s4982_s2, 512 }
  0x38   :  { %p4204_p10 = scmp.ne.s32.totalorder %s4982_s2, %s4203_s17  ;;  %p4207_p11 = scmp.lt.u32.totalorder %s4203_s17, %s4982_s2 }
  0x3a   :  { %p4209_p12 = pnand %p4207_p11, %p4204_p10 }
  0x3c   :  { %4212 = shalt.err (!%p4209_p12)
}
  0x3d   :  { %s4213_s21 = scalar_lea.vmem %s4389_s28, 512  ;;  %p4218_p0 = scmp.lt.s32.totalorder %s4389_s28, %s4389_s28 }
  0x3e   :  { %p4214_p13 = scmp.ne.s32.totalorder %s4389_s28, %s4213_s21  ;;  %p4219_p1 = scmp.lt.s32.totalorder %s4213_s21, %s4213_s21 }
  0x40   :  { %p4220_p2 = por %p4219_p1, %p4218_p0 }
  0x42   :  { %p4221_p3 = pnand %p4220_p2, %p4214_p13 }
  0x44   :  { %4224 = shalt.err (!%p4221_p3)
}
  0x45   :  { %51 = dma.hbm_to_vmem [thread:$0]  %s4982_s2, 512, %s4389_s28, [#allocation6], %s4303_s9, %s4303_s9, %s4304_s10  }
  0x46   :  { %s4309_s23 = smov [#allocation10]   ;;  %s4310_s26 = smov [#allocation11]  }
  0x47   :  { %s69_s25 = sshll.u32 %s4309_s23, 4  ;;  %s81_s27 = sshll.u32 %s4310_s26, 4  ;;  %s70_s25 = int_to_ptr.vmem [resolvable:$true] %s69_s25  ;;  %s4426_s27 = int_to_ptr.vmem [resolvable:$true] %s81_s27 }
  0x48   :  { %s4225_s7 = scalar_lea.hbm %s4984_s4, 256 }
  0x49   :  { %p4226_p4 = scmp.ne.s32.totalorder %s4984_s4, %s4225_s7  ;;  %p4229_p5 = scmp.lt.u32.totalorder %s4225_s7, %s4984_s4 }
  0x4b   :  { %p4231_p6 = pnand %p4229_p5, %p4226_p4 }
  0x4d   :  { %4234 = shalt.err (!%p4231_p6)
}
  0x4e   :  { %s4235_s2 = scalar_lea.vmem %s70_s25, 256  ;;  %p4240_p8 = scmp.lt.s32.totalorder %s70_s25, %s70_s25 }
  0x4f   :  { %p4236_p7 = scmp.ne.s32.totalorder %s70_s25, %s4235_s2  ;;  %p4241_p9 = scmp.lt.s32.totalorder %s4235_s2, %s4235_s2 }
  0x51   :  { %p4242_p10 = por %p4241_p9, %p4240_p8 }
  0x53   :  { %p4243_p11 = pnand %p4242_p10, %p4236_p7 }
  0x55   :  { %4246 = shalt.err (!%p4243_p11)
}
  0x56   :  { %75 = dma.hbm_to_vmem [thread:$0]  %s4984_s4, 256, %s70_s25, [#allocation9], %s4303_s9, %s4303_s9, %s4304_s10  }
  0x57   :  { %s4247_s15 = scalar_lea.hbm %s4985_s5, 2048 }
  0x58   :  { %p4248_p12 = scmp.ne.s32.totalorder %s4985_s5, %s4247_s15  ;;  %p4251_p13 = scmp.lt.u32.totalorder %s4247_s15, %s4985_s5 }
  0x5a   :  { %p4253_p0 = pnand %p4251_p13, %p4248_p12 }
  0x5c   :  { %4256 = shalt.err (!%p4253_p0)
}
  0x5d   :  { %s4257_s20 = scalar_lea.vmem %s4426_s27, 2048  ;;  %p4262_p2 = scmp.lt.s32.totalorder %s4426_s27, %s4426_s27 }
  0x5e   :  { %p4258_p1 = scmp.ne.s32.totalorder %s4426_s27, %s4257_s20  ;;  %p4263_p3 = scmp.lt.s32.totalorder %s4257_s20, %s4257_s20 }
  0x60   :  { %p4264_p4 = por %p4263_p3, %p4262_p2 }
  0x62   :  { %p4265_p5 = pnand %p4264_p4, %p4258_p1 }
  0x64   :  { %4268 = shalt.err (!%p4265_p5)
}
  0x65   :  { %87 = dma.hbm_to_vmem [thread:$0]  %s4985_s5, 2048, %s4426_s27, [#allocation12], %s4303_s9, %s4303_s9, %s4304_s10  }
  0x66   :  { %4291 = dma.done.wait [#allocation3], 512  }
  0x67   :  { %4292 = vsyncadd [#allocation3], 4294966784 }
  0x68   :  { %4293 = dma.done.wait [#allocation6], 1024  }
  0x69   :  { %4294 = vsyncadd [#allocation6], 4294966272 }
  0x6a   :  { %4295 = dma.done.wait [#allocation9], 1280  }
  0x6b   :  { %4296 = vsyncadd [#allocation9], 4294966016 }
  0x6c   :  { %4297 = dma.done.wait [#allocation12], 2048  }
  0x6d   :  { %4298 = vsyncadd [#allocation12], 4294965248  ;;  %vm144_vm0 = vcmask 261120   ;;  %v106_v0 = vld [vmem:[#allocation8] sm:$0xff]  ;;  %v108_v1 = vld [vmem:[#allocation8 + $0x10] sm:$0xff]  ;;  %s4311_s5 = smov 96   ;;  %v140_v54 = vlaneseq }
  0x6e   :  { %v110_v2 = vld [vmem:[#allocation8 + $0x20] sm:$0xff]  ;;  %v4022_v3 = vpack.i.bf16 %v108_v1, %v106_v0  ;;  %v112_v4 = vld [vmem:[#allocation8 + $0x30] sm:$0xff]  ;;  %v3955_v5 = vpack.c.bf16 %v108_v1, %v106_v0  ;;  %v107_v10 = vld [vmem:[#allocation8 + $0x8] sm:$0xff]  ;;  %s4312_s21 = smov 64   ;;  %vm383_vm1 = vcmask 523264   ;;  %v4313_v57 = vmov 0.0  }
  0x6f   :  { %v128_v6 = vld [vmem:[#allocation2] sm:$0xff]  ;;  %v3959_v7 = vpack.c.bf16 %v112_v4, %v110_v2  ;;  %v4027_v9 = vpack.i.bf16 %v112_v4, %v110_v2  ;;  %v109_v11 = vld [vmem:[#allocation8 + $0x18] sm:$0xff]  ;;  %v4032_v12 = vpack.i.bf16 %v107_v10, %v106_v0  ;;  %v111_v13 = vld [vmem:[#allocation8 + $0x28] sm:$0xff]  ;;  %v4485_v55 = vshrl.u32 %v140_v54, 7  ;;  %s4315_s0 = smov 120   ;;  %s4316_s22 = smov 112  }
  0x70   :  { %3725 = vmatprep.mubr.msk.f32.mxu0 %vm144_vm0, %v128_v6  ;;  %v132_v8 = vld [vmem:[#allocation5] sm:$0xff]  ;;  %4023 = vrot.lane.b32.xlu0 %v4022_v3, %s4311_s5  ;;  %v129_v14 = vld [vmem:[#allocation2 + $0x8] sm:$0xff]  ;;  %v4042_v15 = vpack.i.bf16 %v111_v13, %v110_v2  ;;  %v130_v16 = vld [vmem:[#allocation2 + $0x10] sm:$0xff]  ;;  %v4037_v17 = vpack.i.bf16 %v109_v11, %v108_v1  ;;  %vm4314_vm2 = vmmov 0   ;;  %vm585_vm3 = vcmask 64512   ;;  %s4317_s23 = smov 104  }
  0x71   :  { %3956 = vmatprep.subr.bf16.mxu0 %v3955_v5  ;;  %3739 = vmatprep.mubr.msk.f32.mxu1 %vm144_vm0, %v132_v8  ;;  %v113_v18 = vld [vmem:[#allocation8 + $0x38] sm:$0xff]  ;;  %v136_v21 = vld [vmem:[#allocation7] sm:$0xff]  ;;  %v133_v34 = vld [vmem:[#allocation5 + $0x8] sm:$0xff]  ;;  %v142_v56 = vsub.s32 0, %v4485_v55  ;;  %s4318_s25 = smov 32   ;;  %s4319_s26 = smov [#allocation13]  }
  0x72   :  { %3958 = vmatpush3.bf16.msra.mxu0 %v3955_v5  ;;  %4033 = vrot.lane.b32.xlu1 %v4032_v12, %s4312_s21  ;;  %v131_v19 = vld [vmem:[#allocation2 + $0x18] sm:$0xff]  ;;  %v4047_v20 = vpack.i.bf16 %v113_v18, %v112_v4  ;;  %v134_v37 = vld [vmem:[#allocation5 + $0x10] sm:$0xff]  ;;  %v137_v51 = vld [vmem:[#allocation7 + $0x8] sm:$0xff]  ;;  %v244_v4 = vsub.s32 1, %v4485_v55  ;;  %v361_v18 = vsub.s32 2, %v4485_v55  ;;  %s3526_s27 = sshll.u32 %s4319_s26, 4  ;;  %s3527_s27 = int_to_ptr.vmem [resolvable:$true] %s3526_s27 }
  0x73   :  { %3960 = vmatprep.subr.bf16.mxu0 %v3959_v7  ;;  %v135_v43 = vld [vmem:[#allocation5 + $0x18] sm:$0xff]  ;;  %v138_v52 = vld [vmem:[#allocation7 + $0x10] sm:$0xff]  ;;  %v4490_v58 = vld [vmem:[#allocation10] sm:$0xff]  ;;  %s4269_s29 = scalar_lea.vmem %s3527_s27, 512  ;;  %p4274_p7 = scmp.lt.s32.totalorder %s3527_s27, %s3527_s27 }
  0x74   :  { %4028 = vrot.lane.b32.xlu0 %v4027_v9, %s4311_s5  ;;  %v139_v53 = vld [vmem:[#allocation7 + $0x18] sm:$0xff]  ;;  %v143_v59 = vrot.slane %v4490_v58, %v142_v56  ;;  %v245_v5 = vrot.slane %v4490_v58, %v244_v4  ;;  %p4270_p6 = scmp.ne.s32.totalorder %s3527_s27, %s4269_s29  ;;  %p4275_p8 = scmp.lt.s32.totalorder %s4269_s29, %s4269_s29 }
  0x76   :  { %3962 = vmatpush3.bf16.msra.mxu0 %v3959_v7  ;;  %4038 = vrot.lane.b32.xlu1 %v4037_v17, %s4312_s21  ;;  %p4276_p9 = por %p4275_p8, %p4274_p7 }
  0x78   :  { %4043 = vrot.lane.b32.xlu0 %v4042_v15, %s4312_s21  ;;  %p4277_p10 = pnand %p4276_p9, %p4270_p6 }
  0x79   :  { %3726 = vmatmul.mubr.msk.f32.vlgmr.msra.gmra.mrb[0].mxu0 %vm144_vm0, %v129_v14 }
  0x7a   :  { %3728 = vmatprep.mubr.msk.f32.mxu0 %vm144_vm0, %v130_v16  ;;  %4048 = vrot.lane.b32.xlu1 %v4047_v20, %s4312_s21 }
  0x7d   :  { %3729 = vmatmul.mubr.msk.f32.gmra.mrb[2].mxu0 %vm144_vm0, %v131_v19  ;;  %v362_v19 = vrot.slane %v4490_v58, %v361_v18 }
  0x7e   :  { %3753 = vmatprep.mubr.msk.f32.mxu0 %vm144_vm0, %v136_v21 }
  0xe2   :  { %v4024_v22 = vpop.permute.xlu0 %4023 }
  0xe3   :  { %v4026_v23 = vunpack.i.h.bf16 %v4024_v22  ;;  %v4025_v24 = vunpack.i.l.bf16 %v4024_v22 }
  0xe4   :  { %v4034_v29 = vpop.permute.xlu1 %4033 }
  0xe5   :  { %v3963_v25 = vpack.c.bf16 %v4026_v23, %v4025_v24  ;;  %v4036_v31 = vunpack.i.h.bf16 %v4034_v29  ;;  %v4035_v32 = vunpack.i.l.bf16 %v4034_v29 }
  0xe6   :  { %v4029_v26 = vpop.permute.xlu0 %4028 }
  0xe7   :  { %v4031_v27 = vunpack.i.h.bf16 %v4029_v26  ;;  %v4030_v28 = vunpack.i.l.bf16 %v4029_v26  ;;  %3964 = vmatprep.subr.bf16.mxu1 %v3963_v25  ;;  %v384_v41 = vsel %vm383_vm1, %v4035_v32, %v4036_v31 }
  0xe8   :  { %3966 = vmatpush3.bf16.msra.mxu1 %v3963_v25  ;;  %v4039_v35 = vpop.permute.xlu1 %4038 }
  0xe9   :  { %v3967_v30 = vpack.c.bf16 %v4031_v27, %v4030_v28  ;;  %v4041_v38 = vunpack.i.h.bf16 %v4039_v35  ;;  %v4040_v39 = vunpack.i.l.bf16 %v4039_v35 }
  0xea   :  { %v4044_v33 = vpop.permute.xlu0 %4043 }
  0xeb   :  { %3968 = vmatprep.subr.bf16.mxu1 %v3967_v30  ;;  %v4046_v36 = vunpack.i.h.bf16 %v4044_v33  ;;  %v4045_v40 = vunpack.i.l.bf16 %v4044_v33  ;;  %v385_v42 = vsel %vm383_vm1, %v4040_v39, %v4041_v38 }
  0xec   :  { %3970 = vmatpush3.bf16.msra.mxu1 %v3967_v30  ;;  %v4049_v44 = vpop.permute.xlu1 %4048  ;;  %v3971_v45 = vpack.c.bf16 %v385_v42, %v384_v41 }
  0xed   :  { %v4051_v46 = vunpack.i.h.bf16 %v4049_v44  ;;  %v4050_v47 = vunpack.i.l.bf16 %v4049_v44  ;;  %v386_v48 = vsel %vm383_vm1, %v4045_v40, %v4046_v36  ;;  %3764 = vmatprep.subr.mxu1 %v4313_v57 }
  0xee   :  { %3972 = vmatprep.subr.bf16.mxu0 %v3971_v45 }
  0xef   :  { %3740 = vmatmul.mubr.msk.f32.vlgmr.msra.gmra.mrb[0].mxu1 %vm144_vm0, %v133_v34  ;;  %3974 = vmatpush3.bf16.msra.mxu0 %v3971_v45  ;;  %v387_v49 = vsel %vm383_vm1, %v4050_v47, %v4051_v46 }
  0xf0   :  { %3742 = vmatprep.mubr.msk.f32.mxu1 %vm144_vm0, %v134_v37  ;;  %v3975_v50 = vpack.c.bf16 %v387_v49, %v386_v48 }
  0xf2   :  { %3976 = vmatprep.subr.bf16.mxu0 %v3975_v50 }
  0xf3   :  { %3743 = vmatmul.mubr.msk.f32.gmra.mrb[2].mxu1 %vm144_vm0, %v135_v43  ;;  %3978 = vmatpush3.bf16.msra.mxu0 %v3975_v50 }
  0xf4   :  { %3759 = vmatprep.subr.mxu0 %v4313_v57  ;;  %3766 = vmatprep.mubr.msk.f32.mxu1 %vm4314_vm2, %v4313_v57 }
  0xf6   :  { %3754 = vmatmul.mubr.msk.f32.vlgmr.msra.gmra.mrb[4].mxu0 %vm144_vm0, %v137_v51 }
  0xf7   :  { %3756 = vmatprep.mubr.msk.f32.mxu0 %vm144_vm0, %v138_v52 }
  0xfa   :  { %3757 = vmatmul.mubr.msk.f32.gmra.mrb[6].mxu0 %vm144_vm0, %v139_v53 }
  0xfb   :  { %3761 = vmatprep.mubr.msk.f32.mxu0 %vm4314_vm2, %v4313_v57 }
 0x14c   :  { %v3727_v60 = vpop.f32.mrb[0].mxu0 }
 0x14d   :  { %v229_v61 = vadd.f32 %v3727_v60, %v143_v59  ;;  %v223_v62 = vpop.f32.mrb[1].mxu0 }
 0x14e   :  { %v224_v63 = vadd.f32 %v223_v62, %v143_v59 }
 0x14f   :  { %495 = vrot.lane.b32.xlu1 %v229_v61, %s4315_s0 }
 0x150   :  { %493 = vrot.lane.b32.xlu0 %v224_v63, %s4315_s0  ;;  %v3730_v0 = vpop.f32.mrb[2].mxu0 }
 0x151   :  { %v233_v1 = vpop.f32.mrb[3].mxu0  ;;  %v239_v2 = vadd.f32 %v3730_v0, %v143_v59 }
 0x152   :  { %v234_v3 = vadd.f32 %v233_v1, %v143_v59 }
 0x153   :  { %503 = vrot.lane.b32.xlu1 %v229_v61, %s4316_s22 }
 0x154   :  { %501 = vrot.lane.b32.xlu0 %v224_v63, %s4316_s22 }
 0x157   :  { %499 = vrot.lane.b32.xlu1 %v239_v2, %s4315_s0 }
 0x158   :  { %497 = vrot.lane.b32.xlu0 %v234_v3, %s4315_s0 }
 0x15b   :  { %507 = vrot.lane.b32.xlu1 %v239_v2, %s4316_s22 }
 0x15c   :  { %505 = vrot.lane.b32.xlu0 %v234_v3, %s4316_s22 }
 0x1c1   :  { %v496_v24 = vpop.permute.xlu1 %495 }
 0x1c2   :  { %v3741_v6 = vpop.f32.mrb[0].mxu1  ;;  %v494_v25 = vpop.permute.xlu0 %493 }
 0x1c3   :  { %v346_v7 = vadd.f32 %v3741_v6, %v245_v5  ;;  %v340_v8 = vpop.f32.mrb[1].mxu1 }
 0x1c4   :  { %v341_v9 = vadd.f32 %v340_v8, %v245_v5 }
 0x1c5   :  { %3765 = vmatpush3.xpose.msk.msra.mxu1 %vm585_vm3, %v346_v7  ;;  %523 = vrot.lane.b32.xlu1 %v346_v7, %s4315_s0  ;;  %v504_v26 = vpop.permute.xlu1 %503 }
 0x1c6   :  { %v3744_v10 = vpop.f32.mrb[2].mxu1  ;;  %3760 = vmatpush3.xpose.msk.msra.mxu0 %vm585_vm3, %v341_v9  ;;  %521 = vrot.lane.b32.xlu0 %v341_v9, %s4315_s0  ;;  %v502_v27 = vpop.permute.xlu0 %501 }
 0x1c7   :  { %v356_v11 = vadd.f32 %v3744_v10, %v245_v5  ;;  %v350_v12 = vpop.f32.mrb[3].mxu1  ;;  %3774 = vmatprep.subr.mxu1 %v4313_v57  ;;  %3769 = vmatprep.subr.mxu0 %v4313_v57 }
 0x1c8   :  { %v351_v13 = vadd.f32 %v350_v12, %v245_v5  ;;  %3767 = vmatmul.mubr.msk.f32.vlgmr.msra.gmra.mrb[4].mxu1 %vm585_vm3, %v229_v61 }
 0x1c9   :  { %3775 = vmatpush3.xpose.msk.msra.mxu1 %vm585_vm3, %v356_v11  ;;  %531 = vrot.lane.b32.xlu1 %v346_v7, %s4316_s22  ;;  %v3755_v14 = vpop.f32.mrb[4].mxu0  ;;  %v500_v28 = vpop.permute.xlu1 %499 }
 0x1ca   :  { %3762 = vmatmul.mubr.msk.f32.vlgmr.msra.gmra.mrb[8].mxu0 %vm585_vm3, %v224_v63  ;;  %529 = vrot.lane.b32.xlu0 %v341_v9, %s4316_s22  ;;  %v470_v15 = vpop.f32.mrb[5].mxu0  ;;  %v4543_v21 = vadd.f32 %v3755_v14, %v362_v19  ;;  %v498_v29 = vpop.permute.xlu0 %497 }
 0x1cb   :  { %3770 = vmatpush3.xpose.msk.msra.mxu0 %vm585_vm3, %v351_v13  ;;  %3776 = vmatprep.mubr.msk.f32.mxu1 %vm4314_vm2, %v4313_v57  ;;  %v4541_v20 = vadd.f32 %v470_v15, %v362_v19 }
 0x1cc   :  { %3771 = vmatprep.mubr.msk.f32.mxu0 %vm4314_vm2, %v4313_v57  ;;  %3777 = vmatmul.mubr.msk.f32.vlgmr.msra.gmra.mrb[6].mxu1 %vm585_vm3, %v239_v2 }
 0x1cd   :  { %527 = vrot.lane.b32.xlu1 %v356_v11, %s4315_s0  ;;  %3784 = vmatprep.subr.mxu1 %v4313_v57  ;;  %v3758_v16 = vpop.f32.mrb[6].mxu0  ;;  %v508_v30 = vpop.permute.xlu1 %507 }
 0x1ce   :  { %3772 = vmatmul.mubr.msk.f32.vlgmr.msra.gmra.mrb[10].mxu0 %vm585_vm3, %v234_v3  ;;  %525 = vrot.lane.b32.xlu0 %v351_v13, %s4315_s0  ;;  %v480_v17 = vpop.f32.mrb[7].mxu0  ;;  %v4551_v22 = vadd.f32 %v3758_v16, %v362_v19  ;;  %v506_v31 = vpop.permute.xlu0 %505 }
 0x1cf   :  { %3779 = vmatprep.subr.mxu0 %v4313_v57  ;;  %3786 = vmatprep.mubr.msk.f32.mxu1 %vm4314_vm2, %v4313_v57  ;;  %v4557_v23 = vadd.f32 %v480_v17, %v362_v19 }
 0x1d0   :  { %3781 = vmatprep.mubr.msk.f32.mxu0 %vm4314_vm2, %v4313_v57 }
 0x1d1   :  { %535 = vrot.lane.b32.xlu1 %v356_v11, %s4316_s22 }
 0x1d2   :  { %537 = vrot.lane.b32.xlu0 %v341_v9, %s4317_s23 }
 0x1d5   :  { %539 = vrot.lane.b32.xlu1 %v346_v7, %s4317_s23 }
 0x1d6   :  { %533 = vrot.lane.b32.xlu0 %v351_v13, %s4316_s22 }
 0x1d9   :  { %511 = vrot.lane.b32.xlu1 %v229_v61, %s4317_s23 }
 0x1da   :  { %509 = vrot.lane.b32.xlu0 %v224_v63, %s4317_s23 }
 0x1dd   :  { %543 = vrot.lane.b32.xlu1 %v356_v11, %s4317_s23 }
 0x1de   :  { %541 = vrot.lane.b32.xlu0 %v351_v13, %s4317_s23 }
 0x1e1   :  { %515 = vrot.lane.b32.xlu1 %v239_v2, %s4317_s23 }
 0x1e2   :  { %513 = vrot.lane.b32.xlu0 %v234_v3, %s4317_s23 }
 0x1e5   :  { %549 = vrot.lane.b32.xlu1 %v4541_v20, %s4311_s5 }
 0x1e6   :  { %551 = vrot.lane.b32.xlu0 %v4543_v21, %s4311_s5 }
 0x1e9   :  { %563 = vrot.lane.b32.xlu1 %v4543_v21, %s4312_s21 }
 0x1ea   :  { %561 = vrot.lane.b32.xlu0 %v4541_v20, %s4312_s21 }
 0x1ed   :  { %555 = vrot.lane.b32.xlu1 %v4551_v22, %s4311_s5 }
 0x1f1   :  { %553 = vrot.lane.b32.xlu1 %v4557_v23, %s4311_s5 }
 0x237   :  { %v524_v32 = vpop.permute.xlu1 %523 }
 0x238   :  { %3785 = vmatpush3.xpose.msk.msra.mxu1 %vm585_vm3, %v524_v32  ;;  %v522_v33 = vpop.permute.xlu0 %521 }
 0x239   :  { %3780 = vmatpush3.xpose.msk.msra.mxu0 %vm585_vm3, %v522_v33  ;;  %3794 = vmatprep.subr.mxu1 %v4313_v57 }
 0x23a   :  { %3789 = vmatprep.subr.mxu0 %v4313_v57 }
 0x23b   :  { %v532_v34 = vpop.permute.xlu1 %531  ;;  %3787 = vmatmul.mubr.msk.f32.vlgmr.msra.gmra.mrb[8].mxu1 %vm585_vm3, %v496_v24 }
 0x23c   :  { %v530_v35 = vpop.permute.xlu0 %529  ;;  %3782 = vmatmul.mubr.msk.f32.vlgmr.msra.gmra.mrb[12].mxu0 %vm585_vm3, %v494_v25  ;;  %3796 = vmatprep.mubr.msk.f32.mxu1 %vm4314_vm2, %v4313_v57 }
 0x23d   :  { %3791 = vmatprep.mubr.msk.f32.mxu0 %vm4314_vm2, %v4313_v57 }
 0x23f   :  { %v528_v36 = vpop.permute.xlu1 %527 }
 0x240   :  { %3795 = vmatpush3.xpose.msk.msra.mxu1 %vm585_vm3, %v528_v36  ;;  %v526_v37 = vpop.permute.xlu0 %525 }
 0x241   :  { %3790 = vmatpush3.xpose.msk.msra.mxu0 %vm585_vm3, %v526_v37  ;;  %3804 = vmatprep.subr.mxu1 %v4313_v57 }
 0x242   :  { %3799 = vmatprep.subr.mxu0 %v4313_v57 }
 0x243   :  { %v536_v38 = vpop.permute.xlu1 %535  ;;  %3797 = vmatmul.mubr.msk.f32.vlgmr.msra.gmra.mrb[10].mxu1 %vm585_vm3, %v500_v28 }
 0x244   :  { %3805 = vmatpush3.xpose.msk.msra.mxu1 %vm585_vm3, %v532_v34  ;;  %v538_v39 = vpop.permute.xlu0 %537  ;;  %3792 = vmatmul.mubr.msk.f32.vlgmr.msra.gmra.mrb[14].mxu0 %vm585_vm3, %v498_v29 }
 0x245   :  { %3800 = vmatpush3.xpose.msk.msra.mxu0 %vm585_vm3, %v530_v35  ;;  %3806 = vmatprep.mubr.msk.f32.mxu1 %vm4314_vm2, %v4313_v57 }
 0x246   :  { %3801 = vmatprep.mubr.msk.f32.mxu0 %vm4314_vm2, %v4313_v57  ;;  %3814 = vmatprep.subr.mxu1 %v4313_v57 }
 0x247   :  { %v540_v40 = vpop.permute.xlu1 %539  ;;  %3807 = vmatmul.mubr.msk.f32.vlgmr.msra.gmra.mrb[12].mxu1 %vm585_vm3, %v504_v26  ;;  %3809 = vmatprep.subr.mxu0 %v4313_v57 }
 0x248   :  { %3815 = vmatpush3.xpose.msk.msra.mxu1 %vm585_vm3, %v536_v38  ;;  %v534_v41 = vpop.permute.xlu0 %533  ;;  %3802 = vmatmul.mubr.msk.f32.vlgmr.msra.gmra.mrb[16].mxu0 %vm585_vm3, %v502_v27 }
 0x249   :  { %3810 = vmatpush3.xpose.msk.msra.mxu0 %vm585_vm3, %v534_v41  ;;  %3816 = vmatprep.mubr.msk.f32.mxu1 %vm4314_vm2, %v4313_v57 }
 0x24a   :  { %3811 = vmatprep.mubr.msk.f32.mxu0 %vm4314_vm2, %v4313_v57  ;;  %3824 = vmatprep.subr.mxu1 %v4313_v57 }
 0x24b   :  { %v512_v42 = vpop.permute.xlu1 %511  ;;  %3817 = vmatmul.mubr.msk.f32.vlgmr.msra.gmra.mrb[14].mxu1 %vm585_vm3, %v508_v30  ;;  %3819 = vmatprep.subr.mxu0 %v4313_v57 }
 0x24c   :  { %3825 = vmatpush3.xpose.msk.msra.mxu1 %vm585_vm3, %v540_v40  ;;  %v510_v43 = vpop.permute.xlu0 %509  ;;  %3812 = vmatmul.mubr.msk.f32.vlgmr.msra.gmra.mrb[18].mxu0 %vm585_vm3, %v506_v31 }
 0x24d   :  { %3820 = vmatpush3.xpose.msk.msra.mxu0 %vm585_vm3, %v538_v39  ;;  %3826 = vmatprep.mubr.msk.f32.mxu1 %vm4314_vm2, %v4313_v57 }
 0x24e   :  { %3821 = vmatprep.mubr.msk.f32.mxu0 %vm4314_vm2, %v4313_v57  ;;  %3834 = vmatprep.subr.mxu1 %v4313_v57 }
 0x24f   :  { %v544_v44 = vpop.permute.xlu1 %543  ;;  %3827 = vmatmul.mubr.msk.f32.vlgmr.msra.gmra.mrb[16].mxu1 %vm585_vm3, %v512_v42  ;;  %3829 = vmatprep.subr.mxu0 %v4313_v57 }
 0x250   :  { %3835 = vmatpush3.xpose.msk.msra.mxu1 %vm585_vm3, %v544_v44  ;;  %v542_v45 = vpop.permute.xlu0 %541  ;;  %3822 = vmatmul.mubr.msk.f32.vlgmr.msra.gmra.mrb[20].mxu0 %vm585_vm3, %v510_v43 }
 0x251   :  { %3830 = vmatpush3.xpose.msk.msra.mxu0 %vm585_vm3, %v542_v45  ;;  %3836 = vmatprep.mubr.msk.f32.mxu1 %vm4314_vm2, %v4313_v57 }
 0x252   :  { %3831 = vmatprep.mubr.msk.f32.mxu0 %vm4314_vm2, %v4313_v57  ;;  %3839 = vmatprep.subr.mxu0 %v4313_v57 }
 0x253   :  { %v516_v46 = vpop.permute.xlu1 %515  ;;  %3844 = vmatprep.subr.mxu1 %v4313_v57 }
 0x254   :  { %3837 = vmatmul.mubr.msk.f32.vlgmr.msra.gmra.mrb[18].mxu1 %vm585_vm3, %v516_v46  ;;  %v514_v47 = vpop.permute.xlu0 %513 }
 0x255   :  { %3832 = vmatmul.mubr.msk.f32.vlgmr.msra.gmra.mrb[22].mxu0 %vm585_vm3, %v514_v47  ;;  %3845 = vmatpush3.msra.mxu1 %v4543_v21 }
 0x256   :  { %3840 = vmatpush3.msra.mxu0 %v4541_v20  ;;  %3846 = vmatprep.mubr.msk.f32.mxu1 %vm4314_vm2, %v4313_v57 }
 0x257   :  { %3854 = vmatprep.subr.mxu1 %v4313_v57  ;;  %3841 = vmatprep.mubr.msk.f32.mxu0 %vm4314_vm2, %v4313_v57  ;;  %v4687_v40 = vpop.permute.xlu1 %549 }
 0x258   :  { %3849 = vmatprep.subr.mxu0 %v4313_v57  ;;  %v4693_v42 = vpop.permute.xlu0 %551 }
 0x25b   :  { %v4691_v41 = vpop.permute.xlu1 %563 }
 0x25c   :  { %v4699_v44 = vpop.permute.xlu0 %561 }
 0x25f   :  { %v4695_v43 = vpop.permute.xlu1 %555 }
 0x263   :  { %v4701_v45 = vpop.permute.xlu1 %553 }
 0x29b   :  { %v4625_v48 = vpop.f32.mrb[4].mxu1 }
 0x29c   :  { %v3768_v49 = vpop.f32.mrb[5].mxu1  ;;  %v1773_v50 = vsel %vm585_vm3, %v4625_v48, -inf }
 0x29d   :  { %v4629_v51 = vpop.f32.mrb[8].mxu0  ;;  %1774 = vmax.xlane.f32.xlu1 %v1773_v50 }
 0x29e   :  { %v3763_v52 = vpop.f32.mrb[9].mxu0  ;;  %v1770_v53 = vsel %vm585_vm3, %v4629_v51, -inf }
 0x29f   :  { %1771 = vmax.xlane.f32.xlu0 %v1770_v53  ;;  %v4633_v54 = vpop.f32.mrb[6].mxu1 }
 0x2a0   :  { %v3778_v59 = vpop.f32.mrb[7].mxu1  ;;  %v1779_v60 = vsel %vm585_vm3, %v4633_v54, -inf }
 0x2a1   :  { %v4637_v61 = vpop.f32.mrb[10].mxu0 }
 0x2a2   :  { %v3773_v62 = vpop.f32.mrb[11].mxu0  ;;  %v1776_v63 = vsel %vm585_vm3, %v4637_v61, -inf }
 0x2a3   :  { %1780 = vmax.xlane.f32.xlu0 %v1779_v60 }
 0x2a7   :  { %1777 = vmax.xlane.f32.xlu0 %v1776_v63 }
 0x30e   :  { %v4641_v0 = vpop.f32.mrb[8].mxu1 }
 0x30f   :  { %v4643_v1 = vpop.f32.mrb[12].mxu0  ;;  %v3788_v2 = vpop.f32.mrb[9].mxu1  ;;  %v1785_v3 = vsel %vm585_vm3, %v4641_v0, -inf }
 0x310   :  { %1786 = vmax.xlane.f32.xlu0 %v1785_v3  ;;  %v3783_v5 = vpop.f32.mrb[13].mxu0  ;;  %v1782_v6 = vsel %vm585_vm3, %v4643_v1, -inf }
 0x311   :  { %1783 = vmax.xlane.f32.xlu1 %v1782_v6 }
 0x316   :  { %v4649_v7 = vpop.f32.mrb[10].mxu1 }
 0x317   :  { %v4651_v8 = vpop.f32.mrb[14].mxu0  ;;  %v3798_v9 = vpop.f32.mrb[11].mxu1  ;;  %v1791_v10 = vsel %vm585_vm3, %v4649_v7, -inf }
 0x318   :  { %1792 = vmax.xlane.f32.xlu0 %v1791_v10  ;;  %v3793_v11 = vpop.f32.mrb[15].mxu0  ;;  %v1788_v12 = vsel %vm585_vm3, %v4651_v8, -inf }
 0x319   :  { %1789 = vmax.xlane.f32.xlu1 %v1788_v12 }
 0x31a   :  { %v4657_v13 = vpop.f32.mrb[12].mxu1 }
 0x31b   :  { %v4659_v14 = vpop.f32.mrb[16].mxu0  ;;  %v3808_v15 = vpop.f32.mrb[13].mxu1  ;;  %v1797_v16 = vsel %vm585_vm3, %v4657_v13, -inf }
 0x31c   :  { %1798 = vmax.xlane.f32.xlu0 %v1797_v16  ;;  %v3803_v17 = vpop.f32.mrb[17].mxu0  ;;  %v1794_v18 = vsel %vm585_vm3, %v4659_v14, -inf }
 0x31d   :  { %1795 = vmax.xlane.f32.xlu1 %v1794_v18 }
 0x31e   :  { %v4665_v19 = vpop.f32.mrb[14].mxu1 }
 0x31f   :  { %v4667_v24 = vpop.f32.mrb[18].mxu0  ;;  %v3818_v25 = vpop.f32.mrb[15].mxu1  ;;  %v1803_v26 = vsel %vm585_vm3, %v4665_v19, -inf }
 0x320   :  { %1804 = vmax.xlane.f32.xlu0 %v1803_v26  ;;  %v3813_v27 = vpop.f32.mrb[19].mxu0  ;;  %v1800_v28 = vsel %vm585_vm3, %v4667_v24, -inf }
 0x321   :  { %1801 = vmax.xlane.f32.xlu1 %v1800_v28 }
 0x322   :  { %v4673_v29 = vpop.f32.mrb[16].mxu1 }
 0x323   :  { %v3828_v30 = vpop.f32.mrb[17].mxu1  ;;  %v4675_v31 = vpop.f32.mrb[20].mxu0  ;;  %v1809_v32 = vsel %vm585_vm3, %v4673_v29, -inf }
 0x324   :  { %1810 = vmax.xlane.f32.xlu0 %v1809_v32  ;;  %v3823_v33 = vpop.f32.mrb[21].mxu0  ;;  %v1806_v34 = vsel %vm585_vm3, %v4675_v31, -inf }
 0x325   :  { %1807 = vmax.xlane.f32.xlu1 %v1806_v34 }
 0x327   :  { %v4681_v35 = vpop.f32.mrb[18].mxu1 }
 0x328   :  { %v4683_v36 = vpop.f32.mrb[22].mxu0  ;;  %v3838_v37 = vpop.f32.mrb[19].mxu1  ;;  %v1815_v38 = vsel %vm585_vm3, %v4681_v35, -inf }
 0x329   :  { %1816 = vmax.xlane.f32.xlu0 %v1815_v38  ;;  %v3833_v39 = vpop.f32.mrb[23].mxu0  ;;  %v1812_v60 = vsel %vm585_vm3, %v4683_v36, -inf }
 0x32a   :  { %v1775_v47 = vpop.xlane.xlu1 %1774 }
 0x32b   :  { %v1819_v49 = vsub.f32 %v4625_v48, %v1775_v47 }
 0x32c   :  { %v1772_v46 = vpop.xlane.xlu0 %1771 }
 0x32d   :  { %v1836_v52 = vmul.f32 1.442695, %v1819_v49 }
 0x32f   :  { %4052 = vpow2.f32 %v1836_v52 }
 0x330   :  { %v1781_v50 = vpop.xlane.xlu0 %1780 }
 0x331   :  { %v1821_v53 = vsub.f32 %v4633_v54, %v1781_v50  ;;  %v1818_v54 = vsub.f32 %v4629_v51, %v1772_v46 }
 0x333   :  { %v1840_v59 = vmul.f32 1.442695, %v1821_v53  ;;  %v1834_v3 = vmul.f32 1.442695, %v1818_v54 }
 0x334   :  { %v1778_v2 = vpop.xlane.xlu0 %1777 }
 0x335   :  { %4054 = vpow2.f32 %v1840_v59  ;;  %v1820_v5 = vsub.f32 %v4637_v61, %v1778_v2 }
 0x336   :  { %567 = vrot.lane.b32.xlu1 %v4551_v22, %s4312_s21  ;;  %4056 = vpow2.f32 %v1834_v3 }
 0x337   :  { %v1838_v6 = vmul.f32 1.442695, %v1820_v5 }
 0x339   :  { %v4709_v62 = vpop.eup %4052  ;;  %4058 = vpow2.f32 %v1838_v6 }
 0x33f   :  { %565 = vrot.lane.b32.xlu0 %v4557_v23, %s4312_s21  ;;  %v4713_v63 = vpop.eup %4054 }
 0x340   :  { %v1875_v48 = vsel %vm585_vm3, %v4713_v63, 0.0  ;;  %v4721_v9 = vpop.eup %4056 }
 0x341   :  { %v1866_v10 = vsel %vm585_vm3, %v4721_v9, 0.0 }
 0x343   :  { %573 = vrot.lane.b32.xlu0 %v4541_v20, %s4318_s25  ;;  %v1869_v20 = vsel %vm585_vm3, %v4709_v62, 0.0  ;;  %v4725_v11 = vpop.eup %4058 }
 0x35a   :  { %1813 = vmax.xlane.f32.xlu1 %v1812_v60 }
 0x362   :  { %1870 = vadd.xlane.f32.xlu0 %v1869_v20 }
 0x366   :  { %1876 = vadd.xlane.f32.xlu0 %v1875_v48 }
 0x36b   :  { %575 = vrot.lane.b32.xlu1 %v4543_v21, %s4318_s25  ;;  %v1872_v21 = vsel %vm585_vm3, %v4725_v11, 0.0 }
 0x38f   :  { %1867 = vadd.xlane.f32.xlu1 %v1866_v10 }
 0x393   :  { %1873 = vadd.xlane.f32.xlu1 %v1872_v21 }
 0x39d   :  { %v1787_v51 = vpop.xlane.xlu0 %1786 }
 0x39e   :  { %v1823_v12 = vsub.f32 %v4641_v0, %v1787_v51  ;;  %v1784_v15 = vpop.xlane.xlu1 %1783 }
 0x39f   :  { %v1822_v61 = vsub.f32 %v4643_v1, %v1784_v15 }
 0x3a0   :  { %v1844_v16 = vmul.f32 1.442695, %v1823_v12 }
 0x3a1   :  { %v1842_v17 = vmul.f32 1.442695, %v1822_v61 }
 0x3a2   :  { %4060 = vpow2.f32 %v1844_v16 }
 0x3a3   :  { %4062 = vpow2.f32 %v1842_v17 }
 0x3a5   :  { %v1793_v18 = vpop.xlane.xlu0 %1792 }
 0x3a6   :  { %v1825_v25 = vsub.f32 %v4649_v7, %v1793_v18  ;;  %v1790_v26 = vpop.xlane.xlu1 %1789 }
 0x3a7   :  { %v1824_v27 = vsub.f32 %v4651_v8, %v1790_v26 }
 0x3a8   :  { %v1848_v28 = vmul.f32 1.442695, %v1825_v25 }
 0x3a9   :  { %v1846_v30 = vmul.f32 1.442695, %v1824_v27  ;;  %v1799_v32 = vpop.xlane.xlu0 %1798 }
 0x3aa   :  { %4064 = vpow2.f32 %v1848_v28  ;;  %v1827_v33 = vsub.f32 %v4657_v13, %v1799_v32  ;;  %v1796_v0 = vpop.xlane.xlu1 %1795 }
 0x3ab   :  { %4066 = vpow2.f32 %v1846_v30  ;;  %v1826_v1 = vsub.f32 %v4659_v14, %v1796_v0 }
 0x3ac   :  { %v4735_v34 = vpop.eup %4060  ;;  %v1852_v37 = vmul.f32 1.442695, %v1827_v33 }
 0x3ad   :  { %v4737_v38 = vpop.eup %4062  ;;  %v1850_v39 = vmul.f32 1.442695, %v1826_v1  ;;  %v1805_v7 = vpop.xlane.xlu0 %1804  ;;  %v1881_v8 = vsel %vm585_vm3, %v4735_v34, 0.0 }
 0x3ae   :  { %4068 = vpow2.f32 %v1852_v37  ;;  %v1829_v46 = vsub.f32 %v4665_v19, %v1805_v7  ;;  %1882 = vadd.xlane.f32.xlu0 %v1881_v8  ;;  %v1802_v47 = vpop.xlane.xlu1 %1801  ;;  %v1878_v13 = vsel %vm585_vm3, %v4737_v38, 0.0 }
 0x3af   :  { %4070 = vpow2.f32 %v1850_v39  ;;  %v1828_v14 = vsub.f32 %v4667_v24, %v1802_v47  ;;  %1879 = vadd.xlane.f32.xlu1 %v1878_v13 }
 0x3b0   :  { %v1856_v49 = vmul.f32 1.442695, %v1829_v46 }
 0x3b1   :  { %v1854_v50 = vmul.f32 1.442695, %v1828_v14  ;;  %v1811_v52 = vpop.xlane.xlu0 %1810 }
 0x3b2   :  { %4072 = vpow2.f32 %v1856_v49  ;;  %v1831_v53 = vsub.f32 %v4673_v29, %v1811_v52  ;;  %v1808_v59 = vpop.xlane.xlu1 %1807 }
 0x3b3   :  { %4074 = vpow2.f32 %v1854_v50  ;;  %v1830_v60 = vsub.f32 %v4675_v31, %v1808_v59 }
 0x3b4   :  { %v4747_v19 = vpop.eup %4064  ;;  %v1860_v20 = vmul.f32 1.442695, %v1831_v53 }
 0x3b5   :  { %v4749_v48 = vpop.eup %4066  ;;  %v1858_v54 = vmul.f32 1.442695, %v1830_v60  ;;  %v1887_v24 = vsel %vm585_vm3, %v4747_v19, 0.0 }
 0x3b6   :  { %4076 = vpow2.f32 %v1860_v20  ;;  %1888 = vadd.xlane.f32.xlu0 %v1887_v24  ;;  %v1817_v2 = vpop.xlane.xlu0 %1816  ;;  %v1884_v3 = vsel %vm585_vm3, %v4749_v48, 0.0  ;;  %v4786_v27 = vpop.permute.xlu1 %567 }
 0x3b7   :  { %4078 = vpow2.f32 %v1858_v54  ;;  %v1833_v29 = vsub.f32 %v4681_v35, %v1817_v2  ;;  %1885 = vadd.xlane.f32.xlu1 %v1884_v3 }
 0x3b8   :  { %v4756_v31 = vpop.eup %4068 }
 0x3b9   :  { %v4758_v5 = vpop.eup %4070  ;;  %v1864_v6 = vmul.f32 1.442695, %v1833_v29  ;;  %v1893_v10 = vsel %vm585_vm3, %v4756_v31, 0.0 }
 0x3ba   :  { %1894 = vadd.xlane.f32.xlu0 %v1893_v10  ;;  %v1890_v21 = vsel %vm585_vm3, %v4758_v5, 0.0  ;;  %v4788_v28 = vpop.permute.xlu0 %565 }
 0x3bb   :  { %4080 = vpow2.f32 %v1864_v6  ;;  %1891 = vadd.xlane.f32.xlu1 %v1890_v21 }
 0x3bc   :  { %v4764_v51 = vpop.eup %4072 }
 0x3bd   :  { %v4766_v12 = vpop.eup %4074  ;;  %v1899_v35 = vsel %vm585_vm3, %v4764_v51, 0.0 }
 0x3be   :  { %1900 = vadd.xlane.f32.xlu0 %v1899_v35  ;;  %v1896_v15 = vsel %vm585_vm3, %v4766_v12, 0.0  ;;  %v4791_v0 = vpop.permute.xlu0 %573 }
 0x3bf   :  { %1897 = vadd.xlane.f32.xlu1 %v1896_v15 }
 0x3c0   :  { %v4772_v61 = vpop.eup %4076 }
 0x3c1   :  { %v4774_v16 = vpop.eup %4078  ;;  %v1905_v17 = vsel %vm585_vm3, %v4772_v61, 0.0 }
 0x3c2   :  { %1906 = vadd.xlane.f32.xlu0 %v1905_v17  ;;  %v1902_v18 = vsel %vm585_vm3, %v4774_v16, 0.0 }
 0x3c3   :  { %1903 = vadd.xlane.f32.xlu1 %v1902_v18 }
 0x3c5   :  { %v4780_v25 = vpop.eup %4080 }
 0x3c6   :  { %v1911_v26 = vsel %vm585_vm3, %v4780_v25, 0.0 }
 0x3c7   :  { %1912 = vadd.xlane.f32.xlu0 %v1911_v26 }
 0x3dd   :  { %577 = vrot.lane.b32.xlu0 %v4557_v23, %s4318_s25 }
 0x3e7   :  { %v1814_v30 = vpop.xlane.xlu1 %1813 }
 0x3e8   :  { %v1832_v32 = vsub.f32 %v4683_v36, %v1814_v30 }
 0x3ea   :  { %v1862_v33 = vmul.f32 1.442695, %v1832_v32 }
 0x3ec   :  { %4082 = vpow2.f32 %v1862_v33 }
 0x3ef   :  { %v1871_v1 = vpop.xlane.xlu0 %1870 }
 0x3f0   :  { %4084 = vrcp.f32 %v1871_v1 }
 0x3f3   :  { %v1877_v37 = vpop.xlane.xlu0 %1876 }
 0x3f4   :  { %4086 = vrcp.f32 %v1877_v37 }
 0x3f6   :  { %v4793_v39 = vpop.eup %4082 }
 0x3f7   :  { %v1908_v7 = vsel %vm585_vm3, %v4793_v39, 0.0 }
 0x3f8   :  { %1909 = vadd.xlane.f32.xlu1 %v1908_v7 }
 0x3fa   :  { %v4085_v8 = vpop.eup %4084 }
 0x3fb   :  { %v1931_v46 = vmul.f32 %v4085_v8, %v4709_v62  ;;  %v4811_v62 = vpop.permute.xlu1 %575 }
 0x3fd   :  { %3847 = vmatmul.mubr.msk.f32.vlgmr.msra.gmra.mrb[20].mxu1 %vm585_vm3, %v1931_v46 }
 0x3fe   :  { %v4087_v36 = vpop.eup %4086  ;;  %3855 = vmatpush3.msra.mxu1 %v4551_v22  ;;  %3856 = vmatprep.mubr.msk.f32.mxu1 %vm4314_vm2, %v4313_v57 }
 0x3ff   :  { %v1933_v47 = vmul.f32 %v4087_v36, %v4713_v63  ;;  %3864 = vmatprep.subr.mxu1 %v4313_v57 }
 0x401   :  { %3857 = vmatmul.mubr.msk.f32.vlgmr.msra.gmra.mrb[22].mxu1 %vm585_vm3, %v1933_v47 }
 0x402   :  { %3865 = vmatpush3.msra.mxu1 %v4693_v42  ;;  %3866 = vmatprep.mubr.msk.f32.mxu1 %vm4314_vm2, %v4313_v57 }
 0x403   :  { %3874 = vmatprep.subr.mxu1 %v4313_v57 }
 0x409   :  { %579 = vrot.lane.b32.xlu1 %v4551_v22, %s4318_s25 }
 0x41c   :  { %v1868_v13 = vpop.xlane.xlu1 %1867 }
 0x41d   :  { %4088 = vrcp.f32 %v1868_v13 }
 0x420   :  { %v1874_v14 = vpop.xlane.xlu1 %1873 }
 0x421   :  { %4090 = vrcp.f32 %v1874_v14 }
 0x427   :  { %v4089_v63 = vpop.eup %4088 }
 0x428   :  { %v1930_v49 = vmul.f32 %v4089_v63, %v4721_v9 }
 0x42a   :  { %3842 = vmatmul.mubr.msk.f32.vlgmr.msra.gmra.mrb[24].mxu0 %vm585_vm3, %v1930_v49 }
 0x42b   :  { %v4091_v42 = vpop.eup %4090  ;;  %3850 = vmatpush3.msra.mxu0 %v4557_v23  ;;  %3851 = vmatprep.mubr.msk.f32.mxu0 %vm4314_vm2, %v4313_v57 }
 0x42c   :  { %v1932_v50 = vmul.f32 %v4091_v42, %v4725_v11  ;;  %3859 = vmatprep.subr.mxu0 %v4313_v57 }
 0x42e   :  { %3852 = vmatmul.mubr.msk.f32.vlgmr.msra.gmra.mrb[26].mxu0 %vm585_vm3, %v1932_v50 }
 0x42f   :  { %3860 = vmatpush3.msra.mxu0 %v4687_v40  ;;  %3861 = vmatprep.mubr.msk.f32.mxu0 %vm4314_vm2, %v4313_v57 }
 0x430   :  { %3869 = vmatprep.subr.mxu0 %v4313_v57 }
 0x43b   :  { %v1883_v22 = vpop.xlane.xlu0 %1882 }
 0x43c   :  { %4092 = vrcp.f32 %v1883_v22  ;;  %v1880_v9 = vpop.xlane.xlu1 %1879 }
 0x43d   :  { %4094 = vrcp.f32 %v1880_v9 }
 0x443   :  { %v1889_v23 = vpop.xlane.xlu0 %1888 }
 0x444   :  { %4096 = vrcp.f32 %v1889_v23  ;;  %v1886_v52 = vpop.xlane.xlu1 %1885 }
 0x445   :  { %4098 = vrcp.f32 %v1886_v52 }
 0x446   :  { %v4093_v11 = vpop.eup %4092 }
 0x447   :  { %v4095_v53 = vpop.eup %4094  ;;  %v1935_v59 = vmul.f32 %v4093_v11, %v4735_v34  ;;  %v1895_v60 = vpop.xlane.xlu0 %1894 }
 0x448   :  { %v1934_v40 = vmul.f32 %v4095_v53, %v4737_v38  ;;  %4100 = vrcp.f32 %v1895_v60  ;;  %v1892_v20 = vpop.xlane.xlu1 %1891 }
 0x449   :  { %4102 = vrcp.f32 %v1892_v20  ;;  %3867 = vmatmul.mubr.msk.f32.vlgmr.msra.gmra.mrb[24].mxu1 %vm585_vm3, %v1935_v59 }
 0x44a   :  { %3875 = vmatpush3.msra.mxu1 %v4695_v43  ;;  %3862 = vmatmul.mubr.msk.f32.vlgmr.msra.gmra.mrb[28].mxu0 %vm585_vm3, %v1934_v40  ;;  %v3136_v40 = vsub.s32 3, %v4485_v55 }
 0x44b   :  { %3870 = vmatpush3.msra.mxu0 %v4701_v45  ;;  %v1901_v54 = vpop.xlane.xlu0 %1900  ;;  %3876 = vmatprep.mubr.msk.f32.mxu1 %vm4314_vm2, %v4313_v57 }
 0x44c   :  { %4104 = vrcp.f32 %v1901_v54  ;;  %v1898_v34 = vpop.xlane.xlu1 %1897  ;;  %3884 = vmatprep.subr.mxu1 %v4313_v57  ;;  %3871 = vmatprep.mubr.msk.f32.mxu0 %vm4314_vm2, %v4313_v57 }
 0x44d   :  { %4106 = vrcp.f32 %v1898_v34  ;;  %3879 = vmatprep.subr.mxu0 %v4313_v57 }
 0x44e   :  { %v4097_v38 = vpop.eup %4096 }
 0x44f   :  { %v4099_v43 = vpop.eup %4098  ;;  %v1937_v24 = vmul.f32 %v4097_v38, %v4747_v19  ;;  %v1907_v2 = vpop.xlane.xlu0 %1906 }
 0x450   :  { %v1936_v45 = vmul.f32 %v4099_v43, %v4749_v48  ;;  %4108 = vrcp.f32 %v1907_v2  ;;  %v1904_v3 = vpop.xlane.xlu1 %1903  ;;  %v3137_v43 = vrot.slane %v4490_v58, %v3136_v40 }
 0x451   :  { %4110 = vrcp.f32 %v1904_v3  ;;  %3877 = vmatmul.mubr.msk.f32.vlgmr.msra.gmra.mrb[26].mxu1 %vm585_vm3, %v1937_v24 }
 0x452   :  { %v4101_v29 = vpop.eup %4100  ;;  %3885 = vmatpush3.msra.mxu1 %v4691_v41  ;;  %3872 = vmatmul.mubr.msk.f32.vlgmr.msra.gmra.mrb[30].mxu0 %vm585_vm3, %v1936_v45 }
 0x453   :  { %v4103_v6 = vpop.eup %4102  ;;  %v1939_v10 = vmul.f32 %v4101_v29, %v4756_v31  ;;  %3880 = vmatpush3.msra.mxu0 %v4699_v44  ;;  %3886 = vmatprep.mubr.msk.f32.mxu1 %vm4314_vm2, %v4313_v57  ;;  %v4132_v29 = vld [vmem:[#allocation2 + $0x8] sm:$0xff] }
 0x454   :  { %v1938_v19 = vmul.f32 %v4103_v6, %v4758_v5  ;;  %3894 = vmatprep.subr.mxu1 %v4313_v57  ;;  %3881 = vmatprep.mubr.msk.f32.mxu0 %vm4314_vm2, %v4313_v57  ;;  %v1913_v5 = vpop.xlane.xlu0 %1912 }
 0x455   :  { %3887 = vmatmul.mubr.msk.f32.vlgmr.msra.gmra.mrb[28].mxu1 %vm585_vm3, %v1939_v10  ;;  %3889 = vmatprep.subr.mxu0 %v4313_v57  ;;  %4112 = vrcp.f32 %v1913_v5  ;;  %v4133_v10 = vld [vmem:[#allocation2] sm:$0xff] }
 0x456   :  { %v4105_v41 = vpop.eup %4104  ;;  %3895 = vmatpush3.msra.mxu1 %v4786_v27  ;;  %3882 = vmatmul.mubr.msk.f32.vlgmr.msra.gmra.mrb[32].mxu0 %vm585_vm3, %v1938_v19 }
 0x457   :  { %v4107_v44 = vpop.eup %4106  ;;  %v1941_v48 = vmul.f32 %v4105_v41, %v4764_v51  ;;  %3890 = vmatpush3.msra.mxu0 %v4788_v28  ;;  %3896 = vmatprep.mubr.msk.f32.mxu1 %vm4314_vm2, %v4313_v57 }
 0x458   :  { %v1940_v31 = vmul.f32 %v4107_v44, %v4766_v12  ;;  %3904 = vmatprep.subr.mxu1 %v4313_v57  ;;  %3891 = vmatprep.mubr.msk.f32.mxu0 %vm4314_vm2, %v4313_v57  ;;  %v578_v15 = vpop.permute.xlu0 %577 }
 0x459   :  { %3897 = vmatmul.mubr.msk.f32.vlgmr.msra.gmra.mrb[30].mxu1 %vm585_vm3, %v1941_v48  ;;  %3899 = vmatprep.subr.mxu0 %v4313_v57 }
 0x45a   :  { %v4109_v21 = vpop.eup %4108  ;;  %3905 = vmatpush3.msra.mxu1 %v4811_v62  ;;  %3892 = vmatmul.mubr.msk.f32.vlgmr.msra.gmra.mrb[34].mxu0 %vm585_vm3, %v1940_v31 }
 0x45b   :  { %v4111_v51 = vpop.eup %4110  ;;  %v1943_v35 = vmul.f32 %v4109_v21, %v4772_v61  ;;  %3900 = vmatpush3.msra.mxu0 %v4791_v0  ;;  %3906 = vmatprep.mubr.msk.f32.mxu1 %vm4314_vm2, %v4313_v57 }
 0x45c   :  { %v1942_v12 = vmul.f32 %v4111_v51, %v4774_v16  ;;  %3901 = vmatprep.mubr.msk.f32.mxu0 %vm4314_vm2, %v4313_v57  ;;  %3909 = vmatprep.subr.mxu0 %v4313_v57 }
 0x45d   :  { %3907 = vmatmul.mubr.msk.f32.vlgmr.msra.gmra.mrb[32].mxu1 %vm585_vm3, %v1943_v35  ;;  %3914 = vmatprep.subr.mxu1 %v4313_v57 }
 0x45e   :  { %3902 = vmatmul.mubr.msk.f32.vlgmr.msra.gmra.mrb[36].mxu0 %vm585_vm3, %v1942_v12  ;;  %3916 = vmatprep.mubr.msk.f32.mxu1 %vm4314_vm2, %v4313_v57  ;;  %v114_v12 = vld [vmem:[#allocation11] sm:$0xff] }
 0x45f   :  { %3910 = vmatpush3.msra.mxu0 %v578_v15  ;;  %3911 = vmatprep.mubr.msk.f32.mxu0 %vm4314_vm2, %v4313_v57  ;;  %v4113_v16 = vpop.eup %4112  ;;  %v115_v15 = vld [vmem:[#allocation11 + $0x8] sm:$0xff] }
 0x460   :  { %v1945_v17 = vmul.f32 %v4113_v16, %v4780_v25 }
 0x485   :  { %v1910_v61 = vpop.xlane.xlu1 %1909 }
 0x486   :  { %4114 = vrcp.f32 %v1910_v61  ;;  %v116_v61 = vld [vmem:[#allocation11 + $0x10] sm:$0xff] }
 0x489   :  { %v580_v18 = vpop.permute.xlu1 %579 }
 0x48a   :  { %3915 = vmatpush3.msra.mxu1 %v580_v18  ;;  %v3979_v18 = vpack.c.bf16 %v115_v15, %v114_v12 }
 0x48b   :  { %3917 = vmatmul.mubr.msk.f32.vlgmr.msra.gmra.mrb[34].mxu1 %vm585_vm3, %v1945_v17 }
 0x48c   :  { %3980 = vmatprep.subr.bf16.mxu0 %v3979_v18 }
 0x490   :  { %v4115_v26 = vpop.eup %4114 }
 0x491   :  { %v1944_v27 = vmul.f32 %v4115_v26, %v4793_v39  ;;  %v117_v26 = vld [vmem:[#allocation11 + $0x18] sm:$0xff] }
 0x493   :  { %3912 = vmatmul.mubr.msk.f32.vlgmr.msra.gmra.mrb[38].mxu0 %vm585_vm3, %v1944_v27  ;;  %v3983_v27 = vpack.c.bf16 %v117_v26, %v116_v61 }
 0x494   :  { %3982 = vmatpush3.bf16.msra.mxu0 %v3979_v18 }
 0x495   :  { %3984 = vmatprep.subr.bf16.mxu0 %v3983_v27 }
 0x498   :  { %3986 = vmatpush3.bf16.msra.mxu0 %v3983_v27 }
 0x4d0   :  { %v2088_v28 = vpop.f32.mrb[20].mxu1 }
 0x4d1   :  { %v3848_v30 = vpop.f32.mrb[21].mxu1 }
 0x4d4   :  { %v2234_v32 = vpop.f32.mrb[22].mxu1 }
 0x4d5   :  { %v3858_v33 = vpop.f32.mrb[23].mxu1 }
 0x4fd   :  { %v2015_v57 = vpop.f32.mrb[24].mxu0 }
 0x4fe   :  { %v3843_v0 = vpop.f32.mrb[25].mxu0 }
 0x501   :  { %v2161_v1 = vpop.f32.mrb[26].mxu0 }
 0x502   :  { %v3853_v37 = vpop.f32.mrb[27].mxu0 }
 0x51c   :  { %v2380_v7 = vpop.f32.mrb[24].mxu1 }
 0x51d   :  { %v3119_v8 = vadd.f32 %v2380_v7, %v2088_v28  ;;  %v2307_v25 = vpop.f32.mrb[28].mxu0  ;;  %v3868_v46 = vpop.f32.mrb[25].mxu1  ;;  %v4134_v28 = vld [vmem:[#allocation2 + $0x18] sm:$0xff]  ;;  %v4135_v7 = vld [vmem:[#allocation2 + $0x10] sm:$0xff] }
 0x51e   :  { %v3118_v36 = vadd.f32 %v2307_v25, %v2015_v57  ;;  %v3863_v47 = vpop.f32.mrb[29].mxu0 }
 0x524   :  { %v2526_v62 = vpop.f32.mrb[26].mxu1 }
 0x525   :  { %v3121_v13 = vadd.f32 %v2526_v62, %v2234_v32  ;;  %v2453_v14 = vpop.f32.mrb[30].mxu0  ;;  %v3878_v39 = vpop.f32.mrb[27].mxu1 }
 0x526   :  { %v3120_v63 = vadd.f32 %v2453_v14, %v2161_v1  ;;  %v3873_v49 = vpop.f32.mrb[31].mxu0  ;;  %v119_v14 = vld [vmem:[#allocation11 + $0x48] sm:$0xff]  ;;  %v120_v39 = vld [vmem:[#allocation11 + $0x50] sm:$0xff] }
 0x527   :  { %v121_v49 = vld [vmem:[#allocation11 + $0x58] sm:$0xff] }
 0x528   :  { %v2672_v42 = vpop.f32.mrb[28].mxu1 }
 0x529   :  { %v3123_v50 = vadd.f32 %v3119_v8, %v2672_v42  ;;  %v2599_v22 = vpop.f32.mrb[32].mxu0  ;;  %v3888_v9 = vpop.f32.mrb[29].mxu1  ;;  %v3991_v42 = vpack.c.bf16 %v121_v49, %v120_v39 }
 0x52a   :  { %v3122_v23 = vadd.f32 %v3118_v36, %v2599_v22  ;;  %v3883_v52 = vpop.f32.mrb[33].mxu0  ;;  %v123_v22 = vld [vmem:[#allocation11 + $0x68] sm:$0xff] }
 0x52c   :  { %v2818_v11 = vpop.f32.mrb[30].mxu1 }
 0x52d   :  { %v3125_v53 = vadd.f32 %v3121_v13, %v2818_v11  ;;  %v2745_v59 = vpop.f32.mrb[34].mxu0  ;;  %v3898_v60 = vpop.f32.mrb[31].mxu1  ;;  %v118_v13 = vld [vmem:[#allocation11 + $0x40] sm:$0xff] }
 0x52e   :  { %v3124_v20 = vadd.f32 %v3120_v63, %v2745_v59  ;;  %v3893_v54 = vpop.f32.mrb[35].mxu0  ;;  %v3987_v63 = vpack.c.bf16 %v119_v14, %v118_v13 }
 0x530   :  { %v2964_v34 = vpop.f32.mrb[32].mxu1  ;;  %3988 = vmatprep.subr.bf16.mxu1 %v3987_v63 }
 0x531   :  { %v3127_v38 = vadd.f32 %v3123_v50, %v2964_v34  ;;  %v2891_v24 = vpop.f32.mrb[36].mxu0  ;;  %v3908_v2 = vpop.f32.mrb[33].mxu1  ;;  %v122_v50 = vld [vmem:[#allocation11 + $0x60] sm:$0xff]  ;;  %3990 = vmatpush3.bf16.msra.mxu1 %v3987_v63 }
 0x532   :  { %v3126_v45 = vadd.f32 %v3122_v23, %v2891_v24  ;;  %v3903_v3 = vpop.f32.mrb[37].mxu0  ;;  %3992 = vmatprep.subr.bf16.mxu1 %v3991_v42  ;;  %v3995_v9 = vpack.c.bf16 %v123_v22, %v122_v50  ;;  %v124_v22 = vld [vmem:[#allocation11 + $0x70] sm:$0xff] }
 0x533   :  { %v3131_v6 = vadd.f32 %v4132_v29, %v3127_v38  ;;  %v3209_v29 = vsub.s32 4, %v4485_v55 }
 0x534   :  { %v3130_v19 = vadd.f32 %v4133_v10, %v3126_v45 }
 0x535   :  { %v4887_v41 = vadd.f32 %v3137_v43, %v3131_v6  ;;  %3994 = vmatpush3.bf16.msra.mxu1 %v3991_v42 }
 0x536   :  { %v4889_v44 = vadd.f32 %v3137_v43, %v3130_v19  ;;  %3996 = vmatprep.subr.bf16.mxu1 %v3995_v9 }
 0x537   :  { %v3145_v48 = vsel %vm144_vm0, %v4887_v41, 0.0  ;;  %v3160_v58 = vmul.f32 %v4887_v41, %v4887_v41 }
 0x538   :  { %3146 = vadd.xlane.f32.xlu1 %v3145_v48  ;;  %v3142_v31 = vsel %vm144_vm0, %v4889_v44, 0.0  ;;  %v3159_v21 = vmul.f32 %v4889_v44, %v4889_v44  ;;  %v4917_v48 = vld [vmem:[#allocation10] sm:$0xff] }
 0x539   :  { %3143 = vadd.xlane.f32.xlu0 %v3142_v31  ;;  %v3166_v5 = vsel %vm144_vm0, %v3160_v58, 0.0  ;;  %3998 = vmatpush3.bf16.msra.mxu1 %v3995_v9  ;;  %v3210_v31 = vrot.slane %v4917_v48, %v3209_v29  ;;  %v3217_v58 = vsub.s32 5, %v4485_v55  ;;  %v125_v9 = vld [vmem:[#allocation11 + $0x78] sm:$0xff] }
 0x53a   :  { %v3163_v51 = vsel %vm144_vm0, %v3159_v21, 0.0 }
 0x53d   :  { %3167 = vadd.xlane.f32.xlu0 %v3166_v5 }
 0x541   :  { %3164 = vadd.xlane.f32.xlu0 %v3163_v51 }
 0x55e   :  { %v3110_v35 = vpop.f32.mrb[34].mxu1 }
 0x55f   :  { %v3129_v16 = vadd.f32 %v3125_v53, %v3110_v35  ;;  %v3918_v17 = vpop.f32.mrb[35].mxu1  ;;  %v3218_v35 = vrot.slane %v4917_v48, %v3217_v58 }
 0x561   :  { %v3133_v30 = vadd.f32 %v4134_v28, %v3129_v16 }
 0x563   :  { %v4901_v32 = vadd.f32 %v3137_v43, %v3133_v30 }
 0x565   :  { %v3151_v33 = vsel %vm144_vm0, %v4901_v32, 0.0  ;;  %v3162_v57 = vmul.f32 %v4901_v32, %v4901_v32 }
 0x566   :  { %3152 = vadd.xlane.f32.xlu0 %v3151_v33  ;;  %v3037_v0 = vpop.f32.mrb[38].mxu0 }
 0x567   :  { %v3128_v1 = vadd.f32 %v3124_v20, %v3037_v0  ;;  %v3913_v37 = vpop.f32.mrb[39].mxu0  ;;  %v3172_v25 = vsel %vm144_vm0, %v3162_v57, 0.0 }
 0x569   :  { %v3132_v8 = vadd.f32 %v4135_v7, %v3128_v1 }
 0x56a   :  { %3173 = vadd.xlane.f32.xlu0 %v3172_v25 }
 0x56b   :  { %v4908_v46 = vadd.f32 %v3137_v43, %v3132_v8 }
 0x56d   :  { %v3148_v36 = vsel %vm144_vm0, %v4908_v46, 0.0  ;;  %v3161_v47 = vmul.f32 %v4908_v46, %v4908_v46 }
 0x56e   :  { %3149 = vadd.xlane.f32.xlu1 %v3148_v36 }
 0x56f   :  { %v3169_v62 = vsel %vm144_vm0, %v3161_v47, 0.0 }
 0x572   :  { %3170 = vadd.xlane.f32.xlu1 %v3169_v62 }
 0x5c5   :  { %v3147_v23 = vpop.xlane.xlu1 %3146 }
 0x5c6   :  { %v3144_v52 = vpop.xlane.xlu0 %3143  ;;  %v3156_v11 = vmul.f32 0.03125, %v3147_v23  ;;  %v3999_v23 = vpack.c.bf16 %v125_v9, %v124_v22 }
 0x5c7   :  { %v3155_v60 = vmul.f32 0.03125, %v3144_v52 }
 0x5c8   :  { %v3180_v59 = vmul.f32 %v3156_v11, %v3156_v11  ;;  %v3192_v10 = vsub.f32 %v4887_v41, %v3156_v11  ;;  %4000 = vmatprep.subr.bf16.mxu1 %v3999_v23 }
 0x5c9   :  { %v3179_v34 = vmul.f32 %v3155_v60, %v3155_v60  ;;  %v3191_v5 = vsub.f32 %v4889_v44, %v3155_v60  ;;  %4002 = vmatpush3.bf16.msra.mxu1 %v3999_v23 }
 0x5ca   :  { %v3168_v53 = vpop.xlane.xlu0 %3167 }
 0x5cb   :  { %v3176_v40 = vmul.f32 0.03125, %v3168_v53 }
 0x5cd   :  { %v3184_v20 = vsub.f32 %v3176_v40, %v3180_v59 }
 0x5ce   :  { %v3165_v54 = vpop.xlane.xlu0 %3164 }
 0x5cf   :  { %v3188_v38 = vmax.f32 %v3184_v20, 0.0  ;;  %v3175_v43 = vmul.f32 0.03125, %v3165_v54 }
 0x5d1   :  { %v3196_v24 = vadd.f32 1e-05, %v3188_v38  ;;  %v3183_v2 = vsub.f32 %v3175_v43, %v3179_v34 }
 0x5d3   :  { %4116 = vrsqrt.f32 %v3196_v24  ;;  %v3187_v45 = vmax.f32 %v3183_v2, 0.0  ;;  %v3330_v2 = vsub.s32 7, %v4485_v55 }
 0x5d5   :  { %v3195_v3 = vadd.f32 1e-05, %v3187_v45  ;;  %v3331_v45 = vrot.slane %v4917_v48, %v3330_v2 }
 0x5d7   :  { %4118 = vrsqrt.f32 %v3195_v3 }
 0x5dd   :  { %v4117_v6 = vpop.eup %4116 }
 0x5de   :  { %v3204_v19 = vmul.f32 %v4117_v6, %v3192_v10 }
 0x5e0   :  { %v3212_v12 = vmul.f32 %v3210_v31, %v3204_v19 }
 0x5e1   :  { %v4119_v21 = vpop.eup %4118 }
 0x5e2   :  { %v3203_v51 = vmul.f32 %v4119_v21, %v3191_v5  ;;  %v3220_v16 = vadd.f32 %v3218_v35, %v3212_v12 }
 0x5e4   :  { %v3211_v15 = vmul.f32 %v3210_v31, %v3203_v51  ;;  %v3333_v3 = vadd.f32 %v3331_v45, %v3220_v16 }
 0x5e6   :  { %v3219_v61 = vadd.f32 %v3218_v35, %v3211_v15 }
 0x5e8   :  { %3927 = vmatprep.mubr.msk.f32.mxu0 %vm144_vm0, %v3219_v61  ;;  %v3332_v6 = vadd.f32 %v3331_v45, %v3219_v61 }
 0x5e9   :  { %3928 = vmatmul.mubr.msk.f32.vlgmr.msra.gmra.mrb[40].mxu0 %vm144_vm0, %v3220_v16 }
 0x5f3   :  { %v3153_v41 = vpop.xlane.xlu0 %3152 }
 0x5f4   :  { %v3158_v17 = vmul.f32 0.03125, %v3153_v41 }
 0x5f6   :  { %v3182_v26 = vmul.f32 %v3158_v17, %v3158_v17  ;;  %v3194_v47 = vsub.f32 %v4901_v32, %v3158_v17  ;;  %v3225_v32 = vsub.s32 6, %v4485_v55 }
 0x5f7   :  { %v3174_v18 = vpop.xlane.xlu0 %3173 }
 0x5f8   :  { %v3178_v27 = vmul.f32 0.03125, %v3174_v18  ;;  %v3226_v52 = vrot.slane %v4917_v48, %v3225_v32 }
 0x5fa   :  { %v3186_v28 = vsub.f32 %v3178_v27, %v3182_v26 }
 0x5fb   :  { %v3150_v30 = vpop.xlane.xlu1 %3149 }
 0x5fc   :  { %v3190_v44 = vmax.f32 %v3186_v28, 0.0  ;;  %v3157_v33 = vmul.f32 0.03125, %v3150_v30 }
 0x5fe   :  { %v3198_v57 = vadd.f32 1e-05, %v3190_v44  ;;  %v3181_v1 = vmul.f32 %v3157_v33, %v3157_v33  ;;  %v3193_v13 = vsub.f32 %v4908_v46, %v3157_v33 }
 0x5ff   :  { %v3171_v0 = vpop.xlane.xlu1 %3170 }
 0x600   :  { %v3177_v37 = vmul.f32 0.03125, %v3171_v0  ;;  %4120 = vrsqrt.f32 %v3198_v57 }
 0x602   :  { %v3185_v7 = vsub.f32 %v3177_v37, %v3181_v1 }
 0x604   :  { %v3189_v8 = vmax.f32 %v3185_v7, 0.0 }
 0x606   :  { %v3197_v25 = vadd.f32 1e-05, %v3189_v8 }
 0x608   :  { %4122 = vrsqrt.f32 %v3197_v25 }
 0x60a   :  { %v4121_v36 = vpop.eup %4120 }
 0x60b   :  { %v3206_v62 = vmul.f32 %v4121_v36, %v3194_v47 }
 0x60d   :  { %v3214_v63 = vmul.f32 %v3210_v31, %v3206_v62 }
 0x60f   :  { %v3222_v50 = vadd.f32 %v3218_v35, %v3214_v63 }
 0x611   :  { %v3335_v48 = vadd.f32 %v3331_v45, %v3222_v50 }
 0x612   :  { %v4123_v14 = vpop.eup %4122 }
 0x613   :  { %v3205_v39 = vmul.f32 %v4123_v14, %v3193_v13 }
 0x615   :  { %v3213_v49 = vmul.f32 %v3210_v31, %v3205_v39 }
 0x617   :  { %v3221_v42 = vadd.f32 %v3218_v35, %v3213_v49 }
 0x619   :  { %3930 = vmatprep.mubr.msk.f32.mxu0 %vm144_vm0, %v3221_v42  ;;  %v3334_v61 = vadd.f32 %v3331_v45, %v3221_v42  ;;  %v127_v42 = vld [vmem:[#allocation10 + $0x8] sm:$0x3] }
 0x61a   :  { %3931 = vmatmul.mubr.msk.f32.gmra.mrb[42].mxu0 %vm144_vm0, %v3222_v50  ;;  %v3504_v50 = vrot.slane %v127_v42, %v142_v56 }
 0x6bc   :  { %v3929_v46 = vpop.f32.mrb[40].mxu0 }
 0x6bd   :  { %v3311_v11 = vadd.f32 %v3929_v46, %v3226_v52  ;;  %v3305_v53 = vpop.f32.mrb[41].mxu0 }
 0x6be   :  { %v3306_v59 = vadd.f32 %v3305_v53, %v3226_v52 }
 0x6bf   :  { %v3325_v40 = vmax.f32 %v3311_v11, 0.0 }
 0x6c0   :  { %v3324_v60 = vmax.f32 %v3306_v59, 0.0 }
 0x6c2   :  { %3949 = vmatprep.mubr.msk.f32.mxu1 %vm383_vm1, %v3324_v60 }
 0x6c3   :  { %3950 = vmatmul.mubr.msk.f32.vlgmr.msra.gmra.mrb[36].mxu1 %vm383_vm1, %v3325_v40 }
 0x6ed   :  { %v3932_v20 = vpop.f32.mrb[42].mxu0 }
 0x6ee   :  { %v3321_v54 = vadd.f32 %v3932_v20, %v3226_v52  ;;  %v3315_v34 = vpop.f32.mrb[43].mxu0 }
 0x6ef   :  { %v3316_v38 = vadd.f32 %v3315_v34, %v3226_v52  ;;  %v3512_v52 = vrot.slane %v127_v42, %v244_v4 }
 0x6f0   :  { %v3327_v24 = vmax.f32 %v3321_v54, 0.0 }
 0x6f1   :  { %v3326_v43 = vmax.f32 %v3316_v38, 0.0 }
 0x6f3   :  { %3952 = vmatprep.mubr.msk.f32.mxu1 %vm383_vm1, %v3326_v43 }
 0x6f4   :  { %3953 = vmatmul.mubr.msk.f32.gmra.mrb[38].mxu1 %vm383_vm1, %v3327_v24 }
 0x796   :  { %v3951_v29 = vpop.f32.mrb[36].mxu1 }
 0x797   :  { %v3434_v10 = vadd.f32 %v3951_v29, %v3333_v3  ;;  %v3414_v19 = vpop.f32.mrb[37].mxu1 }
 0x798   :  { %v3433_v31 = vadd.f32 %v3414_v19, %v3332_v6 }
 0x799   :  { %v3440_v58 = vsel %vm144_vm0, %v3434_v10, 0.0  ;;  %v3454_v5 = vmul.f32 %v3434_v10, %v3434_v10 }
 0x79a   :  { %3441 = vadd.xlane.f32.xlu0 %v3440_v58  ;;  %v3437_v21 = vsel %vm144_vm0, %v3433_v31, 0.0  ;;  %v3453_v51 = vmul.f32 %v3433_v31, %v3433_v31 }
 0x79b   :  { %3438 = vadd.xlane.f32.xlu1 %v3437_v21  ;;  %v3460_v35 = vsel %vm144_vm0, %v3454_v5, 0.0 }
 0x79c   :  { %v3457_v12 = vsel %vm144_vm0, %v3453_v51, 0.0 }
 0x79e   :  { %3461 = vadd.xlane.f32.xlu0 %v3460_v35 }
 0x79f   :  { %3458 = vadd.xlane.f32.xlu1 %v3457_v12 }
 0x7c7   :  { %v3954_v15 = vpop.f32.mrb[38].mxu1 }
 0x7c8   :  { %v4941_v16 = vadd.f32 %v3954_v15, %v3335_v48  ;;  %v3424_v41 = vpop.f32.mrb[39].mxu1 }
 0x7c9   :  { %v4943_v17 = vadd.f32 %v3424_v41, %v3334_v61 }
 0x7ca   :  { %v3446_v18 = vsel %vm144_vm0, %v4941_v16, 0.0  ;;  %v3456_v26 = vmul.f32 %v4941_v16, %v4941_v16 }
 0x7cb   :  { %3447 = vadd.xlane.f32.xlu0 %v3446_v18  ;;  %v3443_v27 = vsel %vm144_vm0, %v4943_v17, 0.0  ;;  %v3455_v28 = vmul.f32 %v4943_v17, %v4943_v17 }
 0x7cc   :  { %3444 = vadd.xlane.f32.xlu1 %v3443_v27  ;;  %v3466_v30 = vsel %vm144_vm0, %v3456_v26, 0.0 }
 0x7cd   :  { %v3463_v44 = vsel %vm144_vm0, %v3455_v28, 0.0 }
 0x7cf   :  { %3467 = vadd.xlane.f32.xlu0 %v3466_v30 }
 0x7d0   :  { %3464 = vadd.xlane.f32.xlu1 %v3463_v44 }
 0x827   :  { %v3442_v33 = vpop.xlane.xlu0 %3441 }
 0x828   :  { %v3450_v57 = vmul.f32 0.03125, %v3442_v33  ;;  %v3439_v0 = vpop.xlane.xlu1 %3438 }
 0x829   :  { %v3449_v1 = vmul.f32 0.03125, %v3439_v0 }
 0x82a   :  { %v3474_v7 = vmul.f32 %v3450_v57, %v3450_v57  ;;  %v3486_v22 = vsub.f32 %v3434_v10, %v3450_v57 }
 0x82b   :  { %v3462_v37 = vpop.xlane.xlu0 %3461  ;;  %v3473_v36 = vmul.f32 %v3449_v1, %v3449_v1  ;;  %v3485_v23 = vsub.f32 %v3433_v31, %v3449_v1 }
 0x82c   :  { %v3470_v8 = vmul.f32 0.03125, %v3462_v37  ;;  %v3459_v25 = vpop.xlane.xlu1 %3458 }
 0x82d   :  { %v3469_v47 = vmul.f32 0.03125, %v3459_v25 }
 0x82e   :  { %v3478_v62 = vsub.f32 %v3470_v8, %v3474_v7 }
 0x82f   :  { %v3477_v13 = vsub.f32 %v3469_v47, %v3473_v36 }
 0x830   :  { %v3482_v14 = vmax.f32 %v3478_v62, 0.0 }
 0x831   :  { %v3481_v39 = vmax.f32 %v3477_v13, 0.0 }
 0x832   :  { %v3490_v63 = vadd.f32 1e-05, %v3482_v14 }
 0x833   :  { %v3489_v49 = vadd.f32 1e-05, %v3481_v39 }
 0x834   :  { %4124 = vrsqrt.f32 %v3490_v63 }
 0x835   :  { %4126 = vrsqrt.f32 %v3489_v49 }
 0x83e   :  { %v4125_v9 = vpop.eup %4124 }
 0x83f   :  { %v4127_v32 = vpop.eup %4126  ;;  %v3498_v46 = vmul.f32 %v4125_v9, %v3486_v22 }
 0x840   :  { %v3497_v11 = vmul.f32 %v4127_v32, %v3485_v23 }
 0x841   :  { %v3506_v53 = vmul.f32 %v3504_v50, %v3498_v46 }
 0x842   :  { %v3505_v59 = vmul.f32 %v3504_v50, %v3497_v11 }
 0x843   :  { %v3514_v60 = vadd.f32 %v3512_v52, %v3506_v53 }
 0x844   :  { %v3513_v40 = vadd.f32 %v3512_v52, %v3505_v59 }
 0x845   :  { %3518 = vst.msk [vmem:[#allocation13 + $0x8] sm:$0xff] %vm144_vm0, %v3514_v60 }
 0x846   :  { %3517 = vst.msk [vmem:[#allocation13] sm:$0xff] %vm144_vm0, %v3513_v40 }
 0x858   :  { %v3448_v20 = vpop.xlane.xlu0 %3447 }
 0x859   :  { %v3452_v54 = vmul.f32 0.03125, %v3448_v20  ;;  %v3445_v56 = vpop.xlane.xlu1 %3444 }
 0x85a   :  { %v3451_v34 = vmul.f32 0.03125, %v3445_v56 }
 0x85b   :  { %v3476_v43 = vmul.f32 %v3452_v54, %v3452_v54  ;;  %v3488_v31 = vsub.f32 %v4941_v16, %v3452_v54 }
 0x85c   :  { %v3468_v38 = vpop.xlane.xlu0 %3467  ;;  %v3475_v55 = vmul.f32 %v3451_v34, %v3451_v34  ;;  %v3487_v5 = vsub.f32 %v4943_v17, %v3451_v34 }
 0x85d   :  { %v3472_v24 = vmul.f32 0.03125, %v3468_v38  ;;  %v3465_v2 = vpop.xlane.xlu1 %3464 }
 0x85e   :  { %v3471_v4 = vmul.f32 0.03125, %v3465_v2 }
 0x85f   :  { %v3480_v45 = vsub.f32 %v3472_v24, %v3476_v43 }
 0x860   :  { %v3479_v3 = vsub.f32 %v3471_v4, %v3475_v55 }
 0x861   :  { %v3484_v29 = vmax.f32 %v3480_v45, 0.0 }
 0x862   :  { %v3483_v6 = vmax.f32 %v3479_v3, 0.0 }
 0x863   :  { %v3492_v10 = vadd.f32 1e-05, %v3484_v29 }
 0x864   :  { %v3491_v19 = vadd.f32 1e-05, %v3483_v6 }
 0x865   :  { %4128 = vrsqrt.f32 %v3492_v10 }
 0x866   :  { %4130 = vrsqrt.f32 %v3491_v19 }
 0x86f   :  { %v4129_v58 = vpop.eup %4128 }
 0x870   :  { %v4131_v21 = vpop.eup %4130  ;;  %v3500_v51 = vmul.f32 %v4129_v58, %v3488_v31 }
 0x871   :  { %v3499_v35 = vmul.f32 %v4131_v21, %v3487_v5 }
 0x872   :  { %v3508_v12 = vmul.f32 %v3504_v50, %v3500_v51 }
 0x873   :  { %v3507_v48 = vmul.f32 %v3504_v50, %v3499_v35 }
 0x874   :  { %v3516_v15 = vadd.f32 %v3512_v52, %v3508_v12 }
 0x875   :  { %v3515_v61 = vadd.f32 %v3512_v52, %v3507_v48 }
 0x876   :  { %3520 = vst.msk [vmem:[#allocation13 + $0x18] sm:$0xff] %vm144_vm0, %v3516_v15 }
 0x877   :  { %3519 = vst.msk [vmem:[#allocation13 + $0x10] sm:$0xff] %vm144_vm0, %v3515_v61 }
 0x878   :  { %4280 = shalt.err (!%p4277_p10)
}
 0x879   :  { %s4281_s8 = scalar_lea.hbm %s4986_s6, 512 }
 0x87a   :  { %p4282_p11 = scmp.ne.s32.totalorder %s4986_s6, %s4281_s8  ;;  %p4285_p12 = scmp.lt.u32.totalorder %s4281_s8, %s4986_s6 }
 0x87c   :  { %p4287_p13 = pnand %p4285_p12, %p4282_p11 }
 0x87e   :  { %4290 = shalt.err (!%p4287_p13)
}
 0x87f   :  { %3532 = dma.vmem_to_hbm [thread:$0]  %s3527_s27, 512, %s4986_s6, [#allocation4], %s4303_s9, %s4303_s9, %s4304_s10  }
 0x880   :  { %4299 = dma.done.wait [#allocation4], 512  }
 0x881   :  { %4300 = vsyncadd [#allocation4], 4294966784 }
 0x882   :  { %3536 = vsyncpa [#allocation3], 1 }
 0x883   :  { %3537 = vsyncpa [#allocation6], 1 }
 0x884   :  { %3538 = vsyncpa [#allocation9], 1 }
 0x885   :  { %3539 = vsyncpa [#allocation12], 1 }
 0x886   :  { %3540 = vsyncpa [#allocation4], 1 }

</bundles_post_ra>
